<compile_context>
chip_gen: v7x
topology: tpu7x:2x2x1
jax: 0.10.0
libtpu: 0.0.40
codegen_flags: <defaults>
</compile_context>

<pallas_src>
import functools

import jax
import jax.numpy as jnp
import numpy as np
from jax.experimental import pallas as pl
from jax.experimental.pallas import tpu as pltpu


def _lm_head_orpo_kernel(x_ref, w_ref, b_ref, y_ref, ynll_ref,
                         logp_ref, logp_nll_ref, lsum_ref,
                         m_sc, s_sc, t_sc, tn_sc, ls_sc,
                         *, ignore_index: int, tv: int):
    # x_ref: (blk, H)  w_ref: (tv, H)  b_ref: (1, tv)  y_ref/ynll_ref: (blk, 1)
    k = pl.program_id(1)

    @pl.when(k == 0)
    def _init():
        m_sc[...] = jnp.full(m_sc.shape, -jnp.inf, jnp.float32)
        s_sc[...] = jnp.zeros(s_sc.shape, jnp.float32)
        t_sc[...] = jnp.zeros(t_sc.shape, jnp.float32)
        tn_sc[...] = jnp.zeros(tn_sc.shape, jnp.float32)
        ls_sc[...] = jnp.zeros(ls_sc.shape, jnp.float32)

    # (blk, H) x (tv, H) contracted on H -> (blk, tv); native dtypes into the
    # MXU, f32 accumulation (no materialized f32 copies of the operands).
    logits = jax.lax.dot_general(
        x_ref[...], w_ref[...],
        dimension_numbers=(((1,), (1,)), ((), ())),
        preferred_element_type=jnp.float32)
    logits = logits + b_ref[...]                                   # (blk, tv)

    # ---- single pass over the tile: online logsumexp + gathers + logits sum --
    tile_max = jnp.max(logits, axis=-1, keepdims=True)             # (blk, 1)
    m_new = jnp.maximum(m_sc[...], tile_max)
    corr = jnp.exp(m_sc[...] - m_new)                              # 0 on first tile
    s_sc[...] = s_sc[...] * corr + jnp.sum(jnp.exp(logits - m_new),
                                           axis=-1, keepdims=True)
    m_sc[...] = m_new
    ls_sc[...] = ls_sc[...] + jnp.sum(logits, axis=-1, keepdims=True)

    # each valid label lands in exactly one vocab tile, so masked-sum == gather;
    # ignore_index (-100) never matches an id so it contributes 0.
    ids = k * tv + jax.lax.broadcasted_iota(jnp.int32, logits.shape, 1)
    y = y_ref[...]
    ynll = ynll_ref[...]
    t_sc[...] += jnp.sum(jnp.where(ids == y, logits, 0.0),
                         axis=-1, keepdims=True)
    tn_sc[...] += jnp.sum(jnp.where(ids == ynll, logits, 0.0),
                          axis=-1, keepdims=True)

    @pl.when(k == pl.num_programs(1) - 1)
    def _finalize():
        lse = m_sc[...] + jnp.log(s_sc[...])
        valid = y_ref[...] != ignore_index
        valid_nll = ynll_ref[...] != ignore_index
        logp_ref[...] = jnp.where(valid, t_sc[...] - lse, 0.0)
        logp_nll_ref[...] = jnp.where(valid_nll, tn_sc[...] - lse, 0.0)
        lsum_ref[...] = ls_sc[...]


def _pick_vocab_tile(V: int, max_tv: int) -> int:
    for c in (4096, 2048, 1024, 512, 256, 128):
        if c <= max_tv and V % c == 0:
            return c
    return V


def _lm_head_per_token(x_flat, weight, bias, y, y_nll, *,
                       ignore_index=-100, blk=256, max_tv=1024):
    """Per-token log-prob at `y`, at `y_nll`, and per-row logits sum.

    x_flat: (N, H); weight: (V, H) (PyTorch Linear layout, NOT transposed);
    y / y_nll: (N,) int32.  Returns three (N,) float32 arrays.
    """
    N, H = x_flat.shape
    V = weight.shape[0]

    # pad rows up to a multiple of blk with ignored tokens; sliced off below
    N_pad = -(-N // blk) * blk
    if N_pad != N:
        pad = N_pad - N
        x_flat = jnp.pad(x_flat, ((0, pad), (0, 0)))
        y = jnp.concatenate([y, jnp.full((pad,), ignore_index, jnp.int32)])
        y_nll = jnp.concatenate([y_nll, jnp.full((pad,), ignore_index, jnp.int32)])

    tv = _pick_vocab_tile(V, max_tv)
    n_row = N_pad // blk
    n_voc = V // tv

    y2d = y.reshape(N_pad, 1).astype(jnp.int32)
    ynll2d = y_nll.reshape(N_pad, 1).astype(jnp.int32)
    if bias is None:
        b2d = jnp.zeros((1, V), jnp.float32)
    else:
        b2d = bias.reshape(1, V).astype(jnp.float32)

    kernel = functools.partial(_lm_head_orpo_kernel,
                               ignore_index=ignore_index, tv=tv)

    grid_spec = pltpu.PrefetchScalarGridSpec(
        num_scalar_prefetch=0,
        grid=(n_row, n_voc),                       # vocab (reduction) innermost
        in_specs=[
            pl.BlockSpec((blk, H), lambda i, k: (i, 0)),   # x rows (resident over k)
            pl.BlockSpec((tv, H), lambda i, k: (k, 0)),    # weight, (V,H) layout, streamed
            pl.BlockSpec((1, tv), lambda i, k: (0, k)),    # bias tile
            pl.BlockSpec((blk, 1), lambda i, k: (i, 0)),   # ORPO labels
            pl.BlockSpec((blk, 1), lambda i, k: (i, 0)),   # NLL labels
        ],
        out_specs=[
            pl.BlockSpec((blk, 1), lambda i, k: (i, 0)),   # written once per row block
            pl.BlockSpec((blk, 1), lambda i, k: (i, 0)),
            pl.BlockSpec((blk, 1), lambda i, k: (i, 0)),
        ],
        scratch_shapes=[pltpu.VMEM((blk, 1), jnp.float32)] * 5,
    )

    item_x = x_flat.dtype.itemsize
    item_w = weight.dtype.itemsize
    # double-buffered inputs + f32 logits temporaries + scratch (generous estimate)
    vmem_est = (2 * blk * H * item_x + 2 * tv * H * item_w + 2 * tv * 4
                + 4 * 2 * blk * 4 + 3 * 2 * blk * 128 * 4
                + 4 * blk * tv * 4 + 5 * blk * 128 * 4)
    vmem_limit = int(min(64 * 1024 * 1024, max(32 * 1024 * 1024, 1.5 * vmem_est)))

    cost = pl.CostEstimate(
        flops=2 * N_pad * H * V,
        transcendentals=N_pad * V,
        bytes_accessed=(N_pad * H * item_x + n_row * V * H * item_w
                        + n_row * V * 4 + 2 * N_pad * 4 + 3 * N_pad * 4),
    )

    out_shape = (
        jax.ShapeDtypeStruct((N_pad, 1), jnp.float32),
        jax.ShapeDtypeStruct((N_pad, 1), jnp.float32),
        jax.ShapeDtypeStruct((N_pad, 1), jnp.float32),
    )
    logp, logp_nll, lsum = pl.pallas_call(
        kernel,
        out_shape=out_shape,
        grid_spec=grid_spec,
        compiler_params=pltpu.CompilerParams(
            dimension_semantics=("parallel", "arbitrary"),
            vmem_limit_bytes=vmem_limit),
        cost_estimate=cost,
    )(x_flat, weight, b2d, y2d, ynll2d)
    return logp[:N, 0], logp_nll[:N, 0], lsum[:N, 0]


def lm_head_orpo_forward(x, y, weight, bias=None, nll_target=None, *,
                         beta=0.1, alpha=1.0, ignore_index=-100,
                         blk=256, max_tv=1024):
    """Forward of TorchLMHeadORPO.

    x: (B, T, H), y: (B, T) int32 labels, weight: (V, H) (PyTorch Linear layout).
    First B//2 sequences are "chosen", last B//2 are "rejected".
    """
    B, T, H = x.shape
    V = weight.shape[0]
    len_chosen = B // 2

    x_flat = x.reshape(B * T, H)
    y_flat = y.reshape(B * T).astype(jnp.int32)
    nll_flat = (y_flat if nll_target is None
                else nll_target.reshape(B * T).astype(jnp.int32))

    # Single fused kernel: one matmul pass produces both gathers + logits sums.
    logp, logp_nll, lsum = _lm_head_per_token(
        x_flat, weight, bias, y_flat, nll_flat,
        ignore_index=ignore_index, blk=blk, max_tv=max_tv)

    # ---- per-sequence averaged log-probs (average_log_prob=True) ----
    mask_bt = (y_flat != ignore_index).reshape(B, T).astype(jnp.float32)
    logp_bt = logp.reshape(B, T)                       # already 0 at ignored tokens
    all_logps = jnp.sum(logp_bt, axis=-1) / jnp.sum(mask_bt, axis=-1)
    chosen_logps = all_logps[:len_chosen]
    rejected_logps = all_logps[len_chosen:]

    # ---- logits means (over all elements of each half) ----
    lsum_bt = lsum.reshape(B, T)
    chosen_logits_mean = jnp.sum(lsum_bt[:len_chosen]) / (len_chosen * T * V)
    rejected_logits_mean = jnp.sum(lsum_bt[len_chosen:]) / ((B - len_chosen) * T * V)

    # ---- NLL (cross-entropy) over the chosen half ----
    nll_mask_bt = (nll_flat != ignore_index).reshape(B, T).astype(jnp.float32)
    nll_logp_bt = logp_nll.reshape(B, T)
    nll_loss = (jnp.sum(-nll_logp_bt[:len_chosen])
                / jnp.sum(nll_mask_bt[:len_chosen]))

    # ---- ORPO odds-ratio loss (HFORPOLoss.alignment_loss) ----
    log_odds = (chosen_logps - rejected_logps
                - (jnp.log1p(-jnp.exp(chosen_logps))
                   - jnp.log1p(-jnp.exp(rejected_logps))))
    ratio = jax.nn.log_sigmoid(log_odds)
    losses = -beta * ratio
    chosen_rewards = beta * chosen_logps
    rejected_rewards = beta * rejected_logps

    loss = nll_loss * alpha - jnp.mean(losses)
    aux = (chosen_logps, rejected_logps, chosen_logits_mean,
           rejected_logits_mean, nll_loss, chosen_rewards, rejected_rewards,
           jnp.mean(ratio), jnp.mean(log_odds))
    return loss, aux


def _reference_forward(x, y, weight, bias=None, nll_target=None, *,
                       beta=0.1, alpha=1.0, ignore_index=-100):
    """Plain-JAX reference (dense softmax) mirroring the PyTorch module."""
    B, T, H = x.shape
    V = weight.shape[0]
    len_chosen = B // 2
    logits = jnp.einsum("bth,vh->btv", x.astype(jnp.float32),
                        weight.astype(jnp.float32))
    if bias is not None:
        logits = logits + bias.astype(jnp.float32)
    logprobs = jax.nn.log_softmax(logits, axis=-1)

    valid = y != ignore_index
    safe = jnp.where(valid, y, 0)
    per_tok = jnp.take_along_axis(logprobs, safe[..., None], axis=-1)[..., 0]
    per_tok = jnp.where(valid, per_tok, 0.0)
    all_logps = per_tok.sum(-1) / valid.sum(-1)
    chosen_logps = all_logps[:len_chosen]
    rejected_logps = all_logps[len_chosen:]

    chosen_logits_mean = logits[:len_chosen].mean()
    rejected_logits_mean = logits[len_chosen:].mean()

    nll_labels = y if nll_target is None else nll_target
    nvalid = nll_labels != ignore_index
    nsafe = jnp.where(nvalid, nll_labels, 0)
    ntok = jnp.take_along_axis(logprobs, nsafe[..., None], axis=-1)[..., 0]
    ntok = jnp.where(nvalid, ntok, 0.0)
    nll_loss = -ntok[:len_chosen].sum() / nvalid[:len_chosen].sum()

    log_odds = (chosen_logps - rejected_logps
                - (jnp.log1p(-jnp.exp(chosen_logps))
                   - jnp.log1p(-jnp.exp(rejected_logps))))
    ratio = jax.nn.log_sigmoid(log_odds)
    losses = -beta * ratio
    loss = alpha * nll_loss - losses.mean()
    aux = (chosen_logps, rejected_logps, chosen_logits_mean,
           rejected_logits_mean, nll_loss, beta * chosen_logps,
           beta * rejected_logps, ratio.mean(), log_odds.mean())
    return loss, aux


if __name__ == "__main__":
    B, T, H, V = 4, 64, 64, 512          # B even: 2 chosen + 2 rejected sequences
    ignore_index = -100
    beta = 0.1

    key = jax.random.PRNGKey(0)
    kx, kw, ky, km, kn = jax.random.split(key, 5)

    x = jax.random.normal(kx, (B, T, H), dtype=jnp.float32) * 0.5
    # deterministic Linear weight in the PyTorch layout (V, H); bias=False
    weight = jax.random.normal(kw, (V, H), dtype=jnp.float32) * 0.02
    y = jax.random.randint(ky, (B, T), 0, V, dtype=jnp.int32)
    y = jnp.where(jax.random.bernoulli(km, 0.2, (B, T)),
                  jnp.int32(ignore_index), y)
    nll_target = jax.random.randint(kn, (B, T), 0, V, dtype=jnp.int32)

    # blk=128 / max_tv=128 at these toy shapes -> 2 row blocks x 4 vocab tiles,
    # exercising both grid axes and the online-logsumexp accumulation path.
    loss, aux = lm_head_orpo_forward(x, y, weight, beta=beta,
                                     ignore_index=ignore_index,
                                     blk=128, max_tv=128)
    jax.block_until_ready(loss)
    jax.block_until_ready(aux)

    ref_loss, ref_aux = _reference_forward(x, y, weight, beta=beta,
                                           ignore_index=ignore_index)
    np.testing.assert_allclose(np.asarray(loss), np.asarray(ref_loss),
                               rtol=2e-3, atol=2e-3)
    for got, want in zip(aux, ref_aux):
        np.testing.assert_allclose(np.asarray(got), np.asarray(want),
                                   rtol=2e-3, atol=2e-3)

    # fused nll_target path (second gather shares the same matmul pass)
    loss2, aux2 = lm_head_orpo_forward(x, y, weight, nll_target=nll_target,
                                       beta=beta, ignore_index=ignore_index,
                                       blk=128, max_tv=128)
    jax.block_until_ready(loss2)
    ref_loss2, _ = _reference_forward(x, y, weight, nll_target=nll_target,
                                      beta=beta, ignore_index=ignore_index)
    np.testing.assert_allclose(np.asarray(loss2), np.asarray(ref_loss2),
                               rtol=2e-3, atol=2e-3)

    print("KERNEL_OK")
</pallas_src>

<mosaic_0001>
module attributes {stable_mosaic.version = 11 : i64} {
  func.func @_lm_head_orpo_kernel(%arg0: i32, %arg1: i32, %arg2: memref<128x64xf32, #tpu.memory_space<vmem>>, %arg3: memref<128x64xf32, #tpu.memory_space<vmem>>, %arg4: memref<1x128xf32, #tpu.memory_space<vmem>>, %arg5: memref<128x1xi32, #tpu.memory_space<vmem>>, %arg6: memref<128x1xi32, #tpu.memory_space<vmem>>, %arg7: memref<128x1xf32, #tpu.memory_space<vmem>>, %arg8: memref<128x1xf32, #tpu.memory_space<vmem>>, %arg9: memref<128x1xf32, #tpu.memory_space<vmem>>, %arg10: memref<128x1xf32, #tpu.memory_space<vmem>>, %arg11: memref<128x1xf32, #tpu.memory_space<vmem>>, %arg12: memref<128x1xf32, #tpu.memory_space<vmem>>, %arg13: memref<128x1xf32, #tpu.memory_space<vmem>>, %arg14: memref<128x1xf32, #tpu.memory_space<vmem>>) attributes {dimension_semantics = [#tpu.dimension_semantics<parallel>, #tpu.dimension_semantics<arbitrary>], iteration_bounds = array<i64: 2, 4>, scalar_prefetch = 0 : i64, scratch_operands = 5 : i64, tpu.core_type = #tpu.core_type<tc>, window_params = [{transform_indices = @transform_0, window_bounds = array<i64: 128, 64>}, {transform_indices = @transform_1, window_bounds = array<i64: 128, 64>}, {transform_indices = @transform_2, window_bounds = array<i64: 1, 128>}, {transform_indices = @transform_3, window_bounds = array<i64: 128, 1>}, {transform_indices = @transform_4, window_bounds = array<i64: 128, 1>}, {transform_indices = @transform_5, window_bounds = array<i64: 128, 1>}, {transform_indices = @transform_6, window_bounds = array<i64: 128, 1>}, {transform_indices = @transform_7, window_bounds = array<i64: 128, 1>}]} {
    %c0_i32 = arith.constant 0 : i32
    %0 = arith.cmpi eq, %arg1, %c0_i32 : i32
    %1 = arith.extui %0 : i1 to i32
    %c0_i32_0 = arith.constant 0 : i32
    %2 = arith.cmpi ne, %1, %c0_i32_0 : i32
    scf.if %2 {
      %cst_40 = arith.constant 0xFF800000 : f32
      %58 = vector.broadcast %cst_40 : f32 to vector<128x1xf32>
      %c0_41 = arith.constant 0 : index
      %c0_42 = arith.constant 0 : index
      %59 = vector.load %arg10[%c0_41, %c0_42] : memref<128x1xf32, #tpu.memory_space<vmem>>, vector<128x1xf32>
      tpu.vector_store %arg10[%c0_41, %c0_42], %58 {strides = array<i32>} : memref<128x1xf32, #tpu.memory_space<vmem>>, vector<128x1xf32>,
      %cst_43 = arith.constant 0.000000e+00 : f32
      %60 = vector.broadcast %cst_43 : f32 to vector<128x1xf32>
      %c0_44 = arith.constant 0 : index
      %c0_45 = arith.constant 0 : index
      %61 = vector.load %arg11[%c0_44, %c0_45] : memref<128x1xf32, #tpu.memory_space<vmem>>, vector<128x1xf32>
      tpu.vector_store %arg11[%c0_44, %c0_45], %60 {strides = array<i32>} : memref<128x1xf32, #tpu.memory_space<vmem>>, vector<128x1xf32>,
      %cst_46 = arith.constant 0.000000e+00 : f32
      %62 = vector.broadcast %cst_46 : f32 to vector<128x1xf32>
      %c0_47 = arith.constant 0 : index
      %c0_48 = arith.constant 0 : index
      %63 = vector.load %arg12[%c0_47, %c0_48] : memref<128x1xf32, #tpu.memory_space<vmem>>, vector<128x1xf32>
      tpu.vector_store %arg12[%c0_47, %c0_48], %62 {strides = array<i32>} : memref<128x1xf32, #tpu.memory_space<vmem>>, vector<128x1xf32>,
      %cst_49 = arith.constant 0.000000e+00 : f32
      %64 = vector.broadcast %cst_49 : f32 to vector<128x1xf32>
      %c0_50 = arith.constant 0 : index
      %c0_51 = arith.constant 0 : index
      %65 = vector.load %arg13[%c0_50, %c0_51] : memref<128x1xf32, #tpu.memory_space<vmem>>, vector<128x1xf32>
      tpu.vector_store %arg13[%c0_50, %c0_51], %64 {strides = array<i32>} : memref<128x1xf32, #tpu.memory_space<vmem>>, vector<128x1xf32>,
      %cst_52 = arith.constant 0.000000e+00 : f32
      %66 = vector.broadcast %cst_52 : f32 to vector<128x1xf32>
      %c0_53 = arith.constant 0 : index
      %c0_54 = arith.constant 0 : index
      %67 = vector.load %arg14[%c0_53, %c0_54] : memref<128x1xf32, #tpu.memory_space<vmem>>, vector<128x1xf32>
      tpu.vector_store %arg14[%c0_53, %c0_54], %66 {strides = array<i32>} : memref<128x1xf32, #tpu.memory_space<vmem>>, vector<128x1xf32>,
    } else {
    }
    %c0 = arith.constant 0 : index
    %c0_1 = arith.constant 0 : index
    %3 = vector.load %arg2[%c0, %c0_1] : memref<128x64xf32, #tpu.memory_space<vmem>>, vector<128x64xf32>
    %c0_2 = arith.constant 0 : index
    %c0_3 = arith.constant 0 : index
    %4 = vector.load %arg3[%c0_2, %c0_3] : memref<128x64xf32, #tpu.memory_space<vmem>>, vector<128x64xf32>
    %cst = arith.constant dense<0.000000e+00> : vector<128x128xf32>
    %5 = tpu.matmul %3, %4, %cst {dimension_numbers = #tpu.dot_dimension_numbers<[1], [1], [0], [0], [0, 0, 1, 0], [], []>} : vector<128x64xf32>, vector<128x64xf32>, vector<128x128xf32> -> vector<128x128xf32>
    %c0_4 = arith.constant 0 : index
    %c0_5 = arith.constant 0 : index
    %6 = vector.load %arg4[%c0_4, %c0_5] : memref<1x128xf32, #tpu.memory_space<vmem>>, vector<1x128xf32>
    %7 = vector.broadcast %6 : vector<1x128xf32> to vector<128x128xf32>
    %8 = arith.addf %5, %7 : vector<128x128xf32>
    %cst_6 = arith.constant dense<0xFF800000> : vector<128xf32>
    %9 = vector.multi_reduction <maximumf>, %8, %cst_6 [1] : vector<128x128xf32> to vector<128xf32>
    %10 = vector.shape_cast %9 : vector<128xf32> to vector<128x1xf32>
    %c0_7 = arith.constant 0 : index
    %c0_8 = arith.constant 0 : index
    %11 = vector.load %arg10[%c0_7, %c0_8] : memref<128x1xf32, #tpu.memory_space<vmem>>, vector<128x1xf32>
    %12 = arith.maximumf %11, %10 : vector<128x1xf32>
    %c0_9 = arith.constant 0 : index
    %c0_10 = arith.constant 0 : index
    %13 = vector.load %arg10[%c0_9, %c0_10] : memref<128x1xf32, #tpu.memory_space<vmem>>, vector<128x1xf32>
    %14 = arith.subf %13, %12 : vector<128x1xf32>
    %15 = math.exp %14 : vector<128x1xf32>
    %c0_11 = arith.constant 0 : index
    %c0_12 = arith.constant 0 : index
    %16 = vector.load %arg11[%c0_11, %c0_12] : memref<128x1xf32, #tpu.memory_space<vmem>>, vector<128x1xf32>
    %17 = arith.mulf %16, %15 : vector<128x1xf32>
    %18 = vector.broadcast %12 : vector<128x1xf32> to vector<128x128xf32>
    %19 = arith.subf %8, %18 : vector<128x128xf32>
    %20 = math.exp %19 : vector<128x128xf32>
    %cst_13 = arith.constant dense<0.000000e+00> : vector<128xf32>
    %21 = vector.multi_reduction <add>, %20, %cst_13 [1] : vector<128x128xf32> to vector<128xf32>
    %22 = vector.shape_cast %21 : vector<128xf32> to vector<128x1xf32>
    %23 = arith.addf %17, %22 : vector<128x1xf32>
    %c0_14 = arith.constant 0 : index
    %c0_15 = arith.constant 0 : index
    %24 = vector.load %arg11[%c0_14, %c0_15] : memref<128x1xf32, #tpu.memory_space<vmem>>, vector<128x1xf32>
    tpu.vector_store %arg11[%c0_14, %c0_15], %23 {strides = array<i32>} : memref<128x1xf32, #tpu.memory_space<vmem>>, vector<128x1xf32>,
    %c0_16 = arith.constant 0 : index
    %c0_17 = arith.constant 0 : index
    %25 = vector.load %arg10[%c0_16, %c0_17] : memref<128x1xf32, #tpu.memory_space<vmem>>, vector<128x1xf32>
    tpu.vector_store %arg10[%c0_16, %c0_17], %12 {strides = array<i32>} : memref<128x1xf32, #tpu.memory_space<vmem>>, vector<128x1xf32>,
    %c0_18 = arith.constant 0 : index
    %c0_19 = arith.constant 0 : index
    %26 = vector.load %arg14[%c0_18, %c0_19] : memref<128x1xf32, #tpu.memory_space<vmem>>, vector<128x1xf32>
    %cst_20 = arith.constant dense<0.000000e+00> : vector<128xf32>
    %27 = vector.multi_reduction <add>, %8, %cst_20 [1] : vector<128x128xf32> to vector<128xf32>
    %28 = vector.shape_cast %27 : vector<128xf32> to vector<128x1xf32>
    %29 = arith.addf %26, %28 : vector<128x1xf32>
    %c0_21 = arith.constant 0 : index
    %c0_22 = arith.constant 0 : index
    %30 = vector.load %arg14[%c0_21, %c0_22] : memref<128x1xf32, #tpu.memory_space<vmem>>, vector<128x1xf32>
    tpu.vector_store %arg14[%c0_21, %c0_22], %29 {strides = array<i32>} : memref<128x1xf32, #tpu.memory_space<vmem>>, vector<128x1xf32>,
    %c128_i32 = arith.constant 128 : i32
    %31 = arith.muli %arg1, %c128_i32 : i32
    %32 = tpu.iota {dimensions = array<i32: 1>} : vector<128x128xi32>
    %33 = vector.broadcast %31 : i32 to vector<128x128xi32>
    %34 = arith.addi %33, %32 : vector<128x128xi32>
    %c0_23 = arith.constant 0 : index
    %c0_24 = arith.constant 0 : index
    %35 = vector.load %arg5[%c0_23, %c0_24] : memref<128x1xi32, #tpu.memory_space<vmem>>, vector<128x1xi32>
    %c0_25 = arith.constant 0 : index
    %c0_26 = arith.constant 0 : index
    %36 = vector.load %arg6[%c0_25, %c0_26] : memref<128x1xi32, #tpu.memory_space<vmem>>, vector<128x1xi32>
    %c0_27 = arith.constant 0 : index
    %c0_28 = arith.constant 0 : index
    %37 = vector.load %arg12[%c0_27, %c0_28] : memref<128x1xf32, #tpu.memory_space<vmem>>, vector<128x1xf32>
    %38 = vector.broadcast %35 : vector<128x1xi32> to vector<128x128xi32>
    %39 = arith.cmpi eq, %34, %38 : vector<128x128xi32>
    %cst_29 = arith.constant 0.000000e+00 : f32
    %40 = vector.broadcast %cst_29 : f32 to vector<128x128xf32>
    %41 = arith.select %39, %8, %40 : vector<128x128xi1>, vector<128x128xf32>
    %cst_30 = arith.constant dense<0.000000e+00> : vector<128xf32>
    %42 = vector.multi_reduction <add>, %41, %cst_30 [1] : vector<128x128xf32> to vector<128xf32>
    %43 = vector.shape_cast %42 : vector<128xf32> to vector<128x1xf32>
    %44 = arith.addf %37, %43 : vector<128x1xf32>
    %c0_31 = arith.constant 0 : index
    %c0_32 = arith.constant 0 : index
    %45 = vector.load %arg12[%c0_31, %c0_32] : memref<128x1xf32, #tpu.memory_space<vmem>>, vector<128x1xf32>
    tpu.vector_store %arg12[%c0_31, %c0_32], %44 {strides = array<i32>} : memref<128x1xf32, #tpu.memory_space<vmem>>, vector<128x1xf32>,
    %c0_33 = arith.constant 0 : index
    %c0_34 = arith.constant 0 : index
    %46 = vector.load %arg13[%c0_33, %c0_34] : memref<128x1xf32, #tpu.memory_space<vmem>>, vector<128x1xf32>
    %47 = vector.broadcast %36 : vector<128x1xi32> to vector<128x128xi32>
    %48 = arith.cmpi eq, %34, %47 : vector<128x128xi32>
    %cst_35 = arith.constant 0.000000e+00 : f32
    %49 = vector.broadcast %cst_35 : f32 to vector<128x128xf32>
    %50 = arith.select %48, %8, %49 : vector<128x128xi1>, vector<128x128xf32>
    %cst_36 = arith.constant dense<0.000000e+00> : vector<128xf32>
    %51 = vector.multi_reduction <add>, %50, %cst_36 [1] : vector<128x128xf32> to vector<128xf32>
    %52 = vector.shape_cast %51 : vector<128xf32> to vector<128x1xf32>
    %53 = arith.addf %46, %52 : vector<128x1xf32>
    %c0_37 = arith.constant 0 : index
    %c0_38 = arith.constant 0 : index
    %54 = vector.load %arg13[%c0_37, %c0_38] : memref<128x1xf32, #tpu.memory_space<vmem>>, vector<128x1xf32>
    tpu.vector_store %arg13[%c0_37, %c0_38], %53 {strides = array<i32>} : memref<128x1xf32, #tpu.memory_space<vmem>>, vector<128x1xf32>,
    %c3_i32 = arith.constant 3 : i32
    %55 = arith.cmpi eq, %arg1, %c3_i32 : i32
    %56 = arith.extui %55 : i1 to i32
    %c0_i32_39 = arith.constant 0 : i32
    %57 = arith.cmpi ne, %56, %c0_i32_39 : i32
    scf.if %57 {
      %c0_40 = arith.constant 0 : index
      %c0_41 = arith.constant 0 : index
      %58 = vector.load %arg10[%c0_40, %c0_41] : memref<128x1xf32, #tpu.memory_space<vmem>>, vector<128x1xf32>
      %c0_42 = arith.constant 0 : index
      %c0_43 = arith.constant 0 : index
      %59 = vector.load %arg11[%c0_42, %c0_43] : memref<128x1xf32, #tpu.memory_space<vmem>>, vector<128x1xf32>
      %60 = math.log %59 : vector<128x1xf32>
      %61 = arith.addf %58, %60 : vector<128x1xf32>
      %c0_44 = arith.constant 0 : index
      %c0_45 = arith.constant 0 : index
      %62 = vector.load %arg5[%c0_44, %c0_45] : memref<128x1xi32, #tpu.memory_space<vmem>>, vector<128x1xi32>
      %c-100_i32 = arith.constant -100 : i32
      %63 = vector.broadcast %c-100_i32 : i32 to vector<128x1xi32>
      %64 = arith.cmpi ne, %62, %63 : vector<128x1xi32>
      %c0_46 = arith.constant 0 : index
      %c0_47 = arith.constant 0 : index
      %65 = vector.load %arg6[%c0_46, %c0_47] : memref<128x1xi32, #tpu.memory_space<vmem>>, vector<128x1xi32>
      %c-100_i32_48 = arith.constant -100 : i32
      %66 = vector.broadcast %c-100_i32_48 : i32 to vector<128x1xi32>
      %67 = arith.cmpi ne, %65, %66 : vector<128x1xi32>
      %c0_49 = arith.constant 0 : index
      %c0_50 = arith.constant 0 : index
      %68 = vector.load %arg12[%c0_49, %c0_50] : memref<128x1xf32, #tpu.memory_space<vmem>>, vector<128x1xf32>
      %69 = arith.subf %68, %61 : vector<128x1xf32>
      %cst_51 = arith.constant 0.000000e+00 : f32
      %70 = vector.broadcast %cst_51 : f32 to vector<128x1xf32>
      %71 = arith.select %64, %69, %70 : vector<128x1xi1>, vector<128x1xf32>
      %c0_52 = arith.constant 0 : index
      %c0_53 = arith.constant 0 : index
      %72 = vector.load %arg7[%c0_52, %c0_53] : memref<128x1xf32, #tpu.memory_space<vmem>>, vector<128x1xf32>
      tpu.vector_store %arg7[%c0_52, %c0_53], %71 {strides = array<i32>} : memref<128x1xf32, #tpu.memory_space<vmem>>, vector<128x1xf32>,
      %c0_54 = arith.constant 0 : index
      %c0_55 = arith.constant 0 : index
      %73 = vector.load %arg13[%c0_54, %c0_55] : memref<128x1xf32, #tpu.memory_space<vmem>>, vector<128x1xf32>
      %74 = arith.subf %73, %61 : vector<128x1xf32>
      %cst_56 = arith.constant 0.000000e+00 : f32
      %75 = vector.broadcast %cst_56 : f32 to vector<128x1xf32>
      %76 = arith.select %67, %74, %75 : vector<128x1xi1>, vector<128x1xf32>
      %c0_57 = arith.constant 0 : index
      %c0_58 = arith.constant 0 : index
      %77 = vector.load %arg8[%c0_57, %c0_58] : memref<128x1xf32, #tpu.memory_space<vmem>>, vector<128x1xf32>
      tpu.vector_store %arg8[%c0_57, %c0_58], %76 {strides = array<i32>} : memref<128x1xf32, #tpu.memory_space<vmem>>, vector<128x1xf32>,
      %c0_59 = arith.constant 0 : index
      %c0_60 = arith.constant 0 : index
      %78 = vector.load %arg14[%c0_59, %c0_60] : memref<128x1xf32, #tpu.memory_space<vmem>>, vector<128x1xf32>
      %c0_61 = arith.constant 0 : index
      %c0_62 = arith.constant 0 : index
      %79 = vector.load %arg9[%c0_61, %c0_62] : memref<128x1xf32, #tpu.memory_space<vmem>>, vector<128x1xf32>
      tpu.vector_store %arg9[%c0_61, %c0_62], %78 {strides = array<i32>} : memref<128x1xf32, #tpu.memory_space<vmem>>, vector<128x1xf32>,
    } else {
    }
    return
  }
  func.func @transform_0(%arg0: i32, %arg1: i32) -> (i32, i32) {
    %c0_i32 = arith.constant 0 : i32
    %c0_i32_0 = arith.constant 0 : i32
    return %arg0, %c0_i32 : i32, i32
  }
  func.func @transform_1(%arg0: i32, %arg1: i32) -> (i32, i32) {
    %c0_i32 = arith.constant 0 : i32
    %c0_i32_0 = arith.constant 0 : i32
    return %arg1, %c0_i32 : i32, i32
  }
  func.func @transform_2(%arg0: i32, %arg1: i32) -> (i32, i32) {
    %c0_i32 = arith.constant 0 : i32
    %c0_i32_0 = arith.constant 0 : i32
    return %c0_i32, %arg1 : i32, i32
  }
  func.func @transform_3(%arg0: i32, %arg1: i32) -> (i32, i32) {
    %c0_i32 = arith.constant 0 : i32
    %c0_i32_0 = arith.constant 0 : i32
    return %arg0, %c0_i32 : i32, i32
  }
  func.func @transform_4(%arg0: i32, %arg1: i32) -> (i32, i32) {
    %c0_i32 = arith.constant 0 : i32
    %c0_i32_0 = arith.constant 0 : i32
    return %arg0, %c0_i32 : i32, i32
  }
  func.func @transform_5(%arg0: i32, %arg1: i32) -> (i32, i32) {
    %c0_i32 = arith.constant 0 : i32
    %c0_i32_0 = arith.constant 0 : i32
    return %arg0, %c0_i32 : i32, i32
  }
  func.func @transform_6(%arg0: i32, %arg1: i32) -> (i32, i32) {
    %c0_i32 = arith.constant 0 : i32
    %c0_i32_0 = arith.constant 0 : i32
    return %arg0, %c0_i32 : i32, i32
  }
  func.func @transform_7(%arg0: i32, %arg1: i32) -> (i32, i32) {
    %c0_i32 = arith.constant 0 : i32
    %c0_i32_0 = arith.constant 0 : i32
    return %arg0, %c0_i32 : i32, i32
  }
}

</mosaic_0001>

<bundles_post_ra>
// kernel: tpu_custom_call.1
= control target key start
LH: loop header
LB: loop body
LE: loop exit
PB: predicated region body
PF: predicated region fallthrough
CT: control target
= control target key end

     0   :  { %s2479_s24 = smov 0   ;;  %s2481_s25 = smov 0   ;;  %s3744_s0 = inlined_call_operand.vmem [shape: f32[256,64], index: 0, kind: input, shape index: {}]   ;;  %s3745_s1 = inlined_call_operand.vmem [shape: f32[512,64], index: 1, kind: input, shape index: {}]   ;;  %s3746_s2 = inlined_call_operand.vmem [shape: f32[1,512], index: 2, kind: input, shape index: {}]   ;;  %s3747_s3 = inlined_call_operand.vmem [shape: s32[256,1], index: 3, kind: input, shape index: {}]   ;;  %s3748_s4 = inlined_call_operand.vmem [shape: s32[256,1], index: 4, kind: input, shape index: {}]   ;;  %s3749_s5 = inlined_call_operand.vmem [shape: f32[256,1], index: 5, kind: output, shape index: {0}]   ;;  %s3750_s6 = inlined_call_operand.vmem [shape: f32[256,1], index: 6, kind: output, shape index: {1}]   ;;  %s3751_s7 = inlined_call_operand.vmem [shape: f32[256,1], index: 7, kind: output, shape index: {2}]  }
   0x1   :  { %3769 = sst [smem:[#allocation24_spill]] %s3744_s0  ;;  %s2483_s26 = smov 0  }
   0x2   :  { %3770 = sst [smem:[#allocation25_spill]] %s3745_s1  ;;  %s2485_s27 = smov 0  }
   0x3   :  { %s2487_s28 = smov 0  }
   0x4 LB: > { %s27_s29 = sadd.s32 1, %s2426_s26  ;;  %s30_s30 = sadd.s32 1, %s2430_s27  ;;  %s2434_s28 = sphi %s2487_s28, %s18_s28   ;;  %s2430_s27 = sphi %s2485_s27, %s3828_s27   ;;  %s2426_s26 = sphi %s2483_s26, %s3827_s26   ;;  %s2422_s25 = sphi %s2481_s25, %s3826_s25   ;;  %s2418_s24 = sphi %s2479_s24, %s3825_s24  }
   0x5   : > { %p28_p0 = scmp.ge.s32.totalorder %s27_s29, 4  ;;  %p2050_p1 = scmp.ge.s32.totalorder %s2434_s28, 1 }
   0x6   : > { %p296_p2 = scmp.lt.s32.totalorder %s2434_s28, 9 }
   0x7   : > { %s3830_s29 = smov (%p28_p0, %s27_s29), 0  ;;  %s3832_s30 = smov (!%p28_p0, %s30_s30), %s2430_s27 }
   0x8   : > { %p297_p3 = pnand %p2050_p1, %p296_p2  ;;  %p32_p4 = scmp.ge.s32.totalorder %s3832_s30, 2 }
   0xa   : > { %s3834_s30 = smov (%p32_p4, %s3832_s30), 0  ;;  %300 = sbr.rel (%p297_p3) target bundleno = 904 (0x388), region = 40 }
  0x11   : > { %s2051_s8 = sshll.u32 %s2422_s25, 4  ;;  %s2053_s9 = sshll.u32 %s2418_s24, 4 }
  0x12   : > { %p357_p5 = scmp.lt.s32.totalorder %s2051_s8, 31  ;;  %p363_p6 = scmp.lt.s32.totalorder %s2053_s9, 63 }
  0x13   : > { %p368_p7 = scmp.lt.s32.totalorder %s2418_s24, 3  ;;  %s3771_s0 = sld [smem:[#allocation24_spill]] }
  0x14   : > { %s3836_s8 = smov (!%p357_p5, %s2051_s8), 31  ;;  %s3838_s9 = smov (!%p363_p6, %s2053_s9), 63 }
  0x15   : > { %s2052_s10 = sshll.u32 %s3836_s8, 3  ;;  %s2054_s14 = sshll.u32 %s3838_s9, 3 }
  0x16   : > { %s3772_s1 = sld [smem:[#allocation25_spill]]  ;;  %s2526_s20 = scalar_lea.vmem %s3747_s3, %s2052_s10 }
  0x17   : > { %s2529_s21 = scalar_select %p368_p7, %s2418_s24, 3 }
  0x18   : > { %s2534_s25 = scalar_lea.vmem %s3748_s4, %s2052_s10  ;;  %s2539_s11 = scalar_lea.vmem %s3749_s5, %s2052_s10 }
  0x19   : > { %s2516_s13 = scalar_lea.vmem %s3771_s0, %s2052_s10  ;;  %s370_s15 = scalar_lea.vmem %s3746_s2, %s2529_s21 }
  0x1a   : > { %s2548_s19 = scalar_lea.vmem %s3750_s6, %s2052_s10  ;;  %s2553_s22 = scalar_lea.vmem %s3751_s7, %s2052_s10 }
  0x1b   : > { %p2065_p8 = scmp.ne.s32.totalorder %s2418_s24, 0 }
  0x1c   : > { %s2521_s17 = scalar_lea.vmem %s3772_s1, %s2054_s14  ;;  %vm405_vm0 = vcmask (!%p2065_p8), 7168   ;;  %v2436_v0 = vmov (!%p2065_p8), -inf   ;;  %v2437_v1 = vmov (!%p2065_p8), 0.0  }
  0x1d   : > { %404 = sbr.rel (%p2065_p8) target bundleno = 69 (0x45), region = 44  ;;  %406 = vst.msk [vmem:[#allocation2] sm:$0xff] (!%p2065_p8), %vm405_vm0, %v2436_v0  ;;  %407 = vst.msk [vmem:[#allocation2 + $0x8] sm:$0xff] (!%p2065_p8), %vm405_vm0, %v2436_v0 }
  0x1e   : > { %408 = vst.msk [vmem:[#allocation2 + $0x10] sm:$0xff] (!%p2065_p8), %vm405_vm0, %v2436_v0  ;;  %409 = vst.msk [vmem:[#allocation2 + $0x18] sm:$0xff] (!%p2065_p8), %vm405_vm0, %v2436_v0 }
  0x1f   : > { %410 = vst.msk [vmem:[#allocation2 + $0x20] sm:$0xff] (!%p2065_p8), %vm405_vm0, %v2436_v0  ;;  %411 = vst.msk [vmem:[#allocation2 + $0x28] sm:$0xff] (!%p2065_p8), %vm405_vm0, %v2436_v0 }
  0x20   : > { %412 = vst.msk [vmem:[#allocation2 + $0x30] sm:$0xff] (!%p2065_p8), %vm405_vm0, %v2436_v0  ;;  %413 = vst.msk [vmem:[#allocation2 + $0x38] sm:$0xff] (!%p2065_p8), %vm405_vm0, %v2436_v0 }
  0x21   : > { %414 = vst.msk [vmem:[#allocation2 + $0x40] sm:$0xff] (!%p2065_p8), %vm405_vm0, %v2436_v0  ;;  %415 = vst.msk [vmem:[#allocation2 + $0x48] sm:$0xff] (!%p2065_p8), %vm405_vm0, %v2436_v0 }
  0x22   : > { %416 = vst.msk [vmem:[#allocation2 + $0x50] sm:$0xff] (!%p2065_p8), %vm405_vm0, %v2436_v0  ;;  %417 = vst.msk [vmem:[#allocation2 + $0x58] sm:$0xff] (!%p2065_p8), %vm405_vm0, %v2436_v0 }
  0x23   : > { %418 = vst.msk [vmem:[#allocation2 + $0x60] sm:$0xff] (!%p2065_p8), %vm405_vm0, %v2436_v0  ;;  %419 = vst.msk [vmem:[#allocation2 + $0x68] sm:$0xff] (!%p2065_p8), %vm405_vm0, %v2436_v0 }
  0x24   : > { %420 = vst.msk [vmem:[#allocation2 + $0x70] sm:$0xff] %vm405_vm0, %v2436_v0  ;;  %421 = vst.msk [vmem:[#allocation2 + $0x78] sm:$0xff] %vm405_vm0, %v2436_v0 }
  0x25   : > { %422 = vst.msk [vmem:[#allocation3] sm:$0xff] %vm405_vm0, %v2437_v1  ;;  %423 = vst.msk [vmem:[#allocation3 + $0x8] sm:$0xff] %vm405_vm0, %v2437_v1 }
  0x26   : > { %424 = vst.msk [vmem:[#allocation3 + $0x10] sm:$0xff] %vm405_vm0, %v2437_v1  ;;  %425 = vst.msk [vmem:[#allocation3 + $0x18] sm:$0xff] %vm405_vm0, %v2437_v1 }
  0x27   : > { %426 = vst.msk [vmem:[#allocation3 + $0x20] sm:$0xff] %vm405_vm0, %v2437_v1  ;;  %427 = vst.msk [vmem:[#allocation3 + $0x28] sm:$0xff] %vm405_vm0, %v2437_v1 }
  0x28   : > { %428 = vst.msk [vmem:[#allocation3 + $0x30] sm:$0xff] %vm405_vm0, %v2437_v1  ;;  %429 = vst.msk [vmem:[#allocation3 + $0x38] sm:$0xff] %vm405_vm0, %v2437_v1 }
  0x29   : > { %430 = vst.msk [vmem:[#allocation3 + $0x40] sm:$0xff] %vm405_vm0, %v2437_v1  ;;  %431 = vst.msk [vmem:[#allocation3 + $0x48] sm:$0xff] %vm405_vm0, %v2437_v1 }
  0x2a   : > { %432 = vst.msk [vmem:[#allocation3 + $0x50] sm:$0xff] %vm405_vm0, %v2437_v1  ;;  %433 = vst.msk [vmem:[#allocation3 + $0x58] sm:$0xff] %vm405_vm0, %v2437_v1 }
  0x2b   : > { %434 = vst.msk [vmem:[#allocation3 + $0x60] sm:$0xff] %vm405_vm0, %v2437_v1  ;;  %435 = vst.msk [vmem:[#allocation3 + $0x68] sm:$0xff] %vm405_vm0, %v2437_v1 }
  0x2c   : > { %436 = vst.msk [vmem:[#allocation3 + $0x70] sm:$0xff] %vm405_vm0, %v2437_v1  ;;  %437 = vst.msk [vmem:[#allocation3 + $0x78] sm:$0xff] %vm405_vm0, %v2437_v1 }
  0x2d   : > { %438 = vst.msk [vmem:[#allocation4] sm:$0xff] %vm405_vm0, %v2437_v1  ;;  %439 = vst.msk [vmem:[#allocation4 + $0x8] sm:$0xff] %vm405_vm0, %v2437_v1 }
  0x2e   : > { %440 = vst.msk [vmem:[#allocation4 + $0x10] sm:$0xff] %vm405_vm0, %v2437_v1  ;;  %441 = vst.msk [vmem:[#allocation4 + $0x18] sm:$0xff] %vm405_vm0, %v2437_v1 }
  0x2f   : > { %442 = vst.msk [vmem:[#allocation4 + $0x20] sm:$0xff] %vm405_vm0, %v2437_v1  ;;  %443 = vst.msk [vmem:[#allocation4 + $0x28] sm:$0xff] %vm405_vm0, %v2437_v1 }
  0x30   : > { %444 = vst.msk [vmem:[#allocation4 + $0x30] sm:$0xff] %vm405_vm0, %v2437_v1  ;;  %445 = vst.msk [vmem:[#allocation4 + $0x38] sm:$0xff] %vm405_vm0, %v2437_v1 }
  0x31   : > { %446 = vst.msk [vmem:[#allocation4 + $0x40] sm:$0xff] %vm405_vm0, %v2437_v1  ;;  %447 = vst.msk [vmem:[#allocation4 + $0x48] sm:$0xff] %vm405_vm0, %v2437_v1 }
  0x32   : > { %448 = vst.msk [vmem:[#allocation4 + $0x50] sm:$0xff] %vm405_vm0, %v2437_v1  ;;  %449 = vst.msk [vmem:[#allocation4 + $0x58] sm:$0xff] %vm405_vm0, %v2437_v1 }
  0x33   : > { %450 = vst.msk [vmem:[#allocation4 + $0x60] sm:$0xff] %vm405_vm0, %v2437_v1  ;;  %451 = vst.msk [vmem:[#allocation4 + $0x68] sm:$0xff] %vm405_vm0, %v2437_v1 }
  0x34   : > { %452 = vst.msk [vmem:[#allocation4 + $0x70] sm:$0xff] %vm405_vm0, %v2437_v1  ;;  %453 = vst.msk [vmem:[#allocation4 + $0x78] sm:$0xff] %vm405_vm0, %v2437_v1 }
  0x35   : > { %454 = vst.msk [vmem:[#allocation5] sm:$0xff] %vm405_vm0, %v2437_v1  ;;  %455 = vst.msk [vmem:[#allocation5 + $0x8] sm:$0xff] %vm405_vm0, %v2437_v1 }
  0x36   : > { %456 = vst.msk [vmem:[#allocation5 + $0x10] sm:$0xff] %vm405_vm0, %v2437_v1  ;;  %457 = vst.msk [vmem:[#allocation5 + $0x18] sm:$0xff] %vm405_vm0, %v2437_v1 }
  0x37   : > { %458 = vst.msk [vmem:[#allocation5 + $0x20] sm:$0xff] %vm405_vm0, %v2437_v1  ;;  %459 = vst.msk [vmem:[#allocation5 + $0x28] sm:$0xff] %vm405_vm0, %v2437_v1 }
  0x38   : > { %460 = vst.msk [vmem:[#allocation5 + $0x30] sm:$0xff] %vm405_vm0, %v2437_v1  ;;  %461 = vst.msk [vmem:[#allocation5 + $0x38] sm:$0xff] %vm405_vm0, %v2437_v1 }
  0x39   : > { %462 = vst.msk [vmem:[#allocation5 + $0x40] sm:$0xff] %vm405_vm0, %v2437_v1  ;;  %463 = vst.msk [vmem:[#allocation5 + $0x48] sm:$0xff] %vm405_vm0, %v2437_v1 }
  0x3a   : > { %464 = vst.msk [vmem:[#allocation5 + $0x50] sm:$0xff] %vm405_vm0, %v2437_v1  ;;  %465 = vst.msk [vmem:[#allocation5 + $0x58] sm:$0xff] %vm405_vm0, %v2437_v1 }
  0x3b   : > { %466 = vst.msk [vmem:[#allocation5 + $0x60] sm:$0xff] %vm405_vm0, %v2437_v1  ;;  %467 = vst.msk [vmem:[#allocation5 + $0x68] sm:$0xff] %vm405_vm0, %v2437_v1 }
  0x3c   : > { %468 = vst.msk [vmem:[#allocation5 + $0x70] sm:$0xff] %vm405_vm0, %v2437_v1  ;;  %469 = vst.msk [vmem:[#allocation5 + $0x78] sm:$0xff] %vm405_vm0, %v2437_v1 }
  0x3d   : > { %470 = vst.msk [vmem:[#allocation6] sm:$0xff] %vm405_vm0, %v2437_v1  ;;  %471 = vst.msk [vmem:[#allocation6 + $0x8] sm:$0xff] %vm405_vm0, %v2437_v1 }
  0x3e   : > { %472 = vst.msk [vmem:[#allocation6 + $0x10] sm:$0xff] %vm405_vm0, %v2437_v1  ;;  %473 = vst.msk [vmem:[#allocation6 + $0x18] sm:$0xff] %vm405_vm0, %v2437_v1 }
  0x3f   : > { %474 = vst.msk [vmem:[#allocation6 + $0x20] sm:$0xff] %vm405_vm0, %v2437_v1  ;;  %475 = vst.msk [vmem:[#allocation6 + $0x28] sm:$0xff] %vm405_vm0, %v2437_v1 }
  0x40   : > { %476 = vst.msk [vmem:[#allocation6 + $0x30] sm:$0xff] %vm405_vm0, %v2437_v1  ;;  %477 = vst.msk [vmem:[#allocation6 + $0x38] sm:$0xff] %vm405_vm0, %v2437_v1 }
  0x41   : > { %478 = vst.msk [vmem:[#allocation6 + $0x40] sm:$0xff] %vm405_vm0, %v2437_v1  ;;  %479 = vst.msk [vmem:[#allocation6 + $0x48] sm:$0xff] %vm405_vm0, %v2437_v1 }
  0x42   : > { %480 = vst.msk [vmem:[#allocation6 + $0x50] sm:$0xff] %vm405_vm0, %v2437_v1  ;;  %481 = vst.msk [vmem:[#allocation6 + $0x58] sm:$0xff] %vm405_vm0, %v2437_v1 }
  0x43   : > { %482 = vst.msk [vmem:[#allocation6 + $0x60] sm:$0xff] %vm405_vm0, %v2437_v1  ;;  %483 = vst.msk [vmem:[#allocation6 + $0x68] sm:$0xff] %vm405_vm0, %v2437_v1 }
  0x44   : > { %484 = vst.msk [vmem:[#allocation6 + $0x70] sm:$0xff] %vm405_vm0, %v2437_v1  ;;  %485 = vst.msk [vmem:[#allocation6 + $0x78] sm:$0xff] %vm405_vm0, %v2437_v1 }
  0x45 PF: > { %v502_v2 = vld [vmem:[%s2521_s17] sm:$0xff]  ;;  %v503_v3 = vld [vmem:[%s2521_s17 + $0x8] sm:$0xff]  ;;  %vm525_vm1 = vcmask 523264   ;;  %v504_v4 = vld [vmem:[%s2521_s17 + $0x10] sm:$0xff]  ;;  %v2438_v8 = vmov 0   ;;  %s2099_s0 = sshll.u32 %s2418_s24, 7 }
  0x46   : > { %v2191_v5 = vpack.c.bf16 %v503_v3, %v502_v2  ;;  %vm2705_vm2 = vmpackc.low %vm525_vm1, %vm525_vm1  ;;  %v505_v7 = vld [vmem:[%s2521_s17 + $0x18] sm:$0xff]  ;;  %2298 = vset.pattern.permute.xlu0 %v2438_v8  ;;  %2299 = vset.pattern.permute.xlu1 %v2438_v8  ;;  %v486_v10 = vld [vmem:[%s2516_s13] sm:$0xff]  ;;  %p2100_p9 = scmp.ne.s32.totalorder %s2418_s24, 3 }
  0x47   : > { %v2197_v9 = vpack.c.bf16 %v505_v7, %v504_v4  ;;  %v506_v11 = vld [vmem:[%s2521_s17 + $0x20] sm:$0xff]  ;;  %v507_v12 = vld [vmem:[%s2521_s17 + $0x28] sm:$0xff]  ;;  %2167 = vmatprep.mubr.msk.f32.mxu0 %vm525_vm1, %v486_v10  ;;  %v508_v17 = vld [vmem:[%s2521_s17 + $0x30] sm:$0xff] }
  0x48   : > { %2193 = vmatprep.subr.msk.bf16.mxu0 %vm2705_vm2, %v2191_v5  ;;  %2239 = vmatprep.subr.msk.bf16.mxu1 %vm2705_vm2, %v2191_v5  ;;  %v494_v13 = vld [vmem:[%s2516_s13 + $0x40] sm:$0xff]  ;;  %v2203_v14 = vpack.c.bf16 %v507_v12, %v506_v11  ;;  %v1206_v16 = vld [vmem:[%s2526_s20 + $0x8] sm:$0xff]  ;;  %v509_v18 = vld [vmem:[%s2521_s17 + $0x38] sm:$0xff] }
  0x49   : > { %2196 = vmatpush3.bf16.xpose.msk.msra.mxu0 %vm2705_vm2, %v2191_v5  ;;  %2247 = vmatpush3.bf16.xpose.msk.msra.mxu1 %vm2705_vm2, %v2191_v5  ;;  %v1205_v15 = vld [vmem:[%s2526_s20] sm:$0xff]  ;;  %v1208_v19 = vld [vmem:[%s2526_s20 + $0x18] sm:$0xff]  ;;  %v1207_v20 = vld [vmem:[%s2526_s20 + $0x10] sm:$0xff]  ;;  %v2209_v21 = vpack.c.bf16 %v509_v18, %v508_v17 }
  0x4a   : > { %2199 = vmatprep.subr.msk.bf16.mxu0 %vm2705_vm2, %v2197_v9  ;;  %2240 = vmatprep.subr.msk.bf16.mxu1 %vm2705_vm2, %v2197_v9  ;;  %v1210_v22 = vld [vmem:[%s2526_s20 + $0x28] sm:$0xff]  ;;  %v1209_v23 = vld [vmem:[%s2526_s20 + $0x20] sm:$0xff]  ;;  %v1212_v26 = vld [vmem:[%s2526_s20 + $0x38] sm:$0xff] }
  0x4b   : > { %2179 = vmatprep.mubr.msk.f32.mxu1 %vm525_vm1, %v494_v13  ;;  %1254 = vperm.xlu0 %2298, %v1205_v15   ;;  %v510_v24 = vld [vmem:[%s2521_s17 + $0x40] sm:$0xff]  ;;  %v511_v25 = vld [vmem:[%s2521_s17 + $0x48] sm:$0xff]  ;;  %v1211_v27 = vld [vmem:[%s2526_s20 + $0x30] sm:$0xff] }
  0x4c   : > { %1257 = vperm.xlu1 %2299, %v1206_v16   ;;  %v2215_v28 = vpack.c.bf16 %v511_v25, %v510_v24  ;;  %v1214_v29 = vld [vmem:[%s2526_s20 + $0x48] sm:$0xff]  ;;  %v1213_v30 = vld [vmem:[%s2526_s20 + $0x40] sm:$0xff]  ;;  %v512_v31 = vld [vmem:[%s2521_s17 + $0x50] sm:$0xff]  ;;  %v1203_v25 = vstv %s2099_s0 }
  0x4d   : > { %v513_v32 = vld [vmem:[%s2521_s17 + $0x58] sm:$0xff]  ;;  %v1215_v34 = vld [vmem:[%s2526_s20 + $0x50] sm:$0xff]  ;;  %v1218_v36 = vld [vmem:[%s2526_s20 + $0x68] sm:$0xff] }
  0x4e   : > { %v1216_v33 = vld [vmem:[%s2526_s20 + $0x58] sm:$0xff]  ;;  %v2221_v35 = vpack.c.bf16 %v513_v32, %v512_v31  ;;  %v1217_v37 = vld [vmem:[%s2526_s20 + $0x60] sm:$0xff]  ;;  %v515_v39 = vld [vmem:[%s2521_s17 + $0x68] sm:$0xff] }
  0x4f   : > { %1263 = vperm.xlu0 %2298, %v1208_v19   ;;  %v514_v38 = vld [vmem:[%s2521_s17 + $0x60] sm:$0xff]  ;;  %v1220_v40 = vld [vmem:[%s2526_s20 + $0x78] sm:$0xff]  ;;  %v1219_v41 = vld [vmem:[%s2526_s20 + $0x70] sm:$0xff] }
  0x50   : > { %1260 = vperm.xlu1 %2299, %v1207_v20   ;;  %v2227_v42 = vpack.c.bf16 %v515_v39, %v514_v38  ;;  %v1221_v43 = vld [vmem:[%s2534_s25] sm:$0xff]  ;;  %v1222_v44 = vld [vmem:[%s2534_s25 + $0x8] sm:$0xff]  ;;  %v516_v45 = vld [vmem:[%s2521_s17 + $0x70] sm:$0xff] }
  0x51   : > { %2202 = vmatpush3.bf16.xpose.msk.msra.mxu0 %vm2705_vm2, %v2197_v9  ;;  %2248 = vmatpush3.bf16.xpose.msk.msra.mxu1 %vm2705_vm2, %v2197_v9  ;;  %v517_v46 = vld [vmem:[%s2521_s17 + $0x78] sm:$0xff]  ;;  %v1223_v48 = vld [vmem:[%s2534_s25 + $0x10] sm:$0xff]  ;;  %v1226_v50 = vld [vmem:[%s2534_s25 + $0x28] sm:$0xff] }
  0x52   : > { %2205 = vmatprep.subr.msk.bf16.mxu0 %vm2705_vm2, %v2203_v14  ;;  %2241 = vmatprep.subr.msk.bf16.mxu1 %vm2705_vm2, %v2203_v14  ;;  %v1224_v47 = vld [vmem:[%s2534_s25 + $0x18] sm:$0xff]  ;;  %v2233_v49 = vpack.c.bf16 %v517_v46, %v516_v45  ;;  %v1225_v51 = vld [vmem:[%s2534_s25 + $0x20] sm:$0xff]  ;;  %v1227_v53 = vld [vmem:[%s2534_s25 + $0x30] sm:$0xff] }
  0x53   : > { %1269 = vperm.xlu0 %2298, %v1210_v22   ;;  %v1228_v52 = vld [vmem:[%s2534_s25 + $0x38] sm:$0xff]  ;;  %v1230_v54 = vld [vmem:[%s2534_s25 + $0x48] sm:$0xff]  ;;  %v1229_v55 = vld [vmem:[%s2534_s25 + $0x40] sm:$0xff]  ;;  %v1201_v22 = vlaneseq }
  0x54   : > { %1266 = vperm.xlu1 %2299, %v1209_v23   ;;  %v1232_v56 = vld [vmem:[%s2534_s25 + $0x58] sm:$0xff]  ;;  %v1231_v57 = vld [vmem:[%s2534_s25 + $0x50] sm:$0xff]  ;;  %v487_v58 = vld [vmem:[%s2516_s13 + $0x8] sm:$0xff] }
  0x55   : > { %v495_v59 = vld [vmem:[%s2516_s13 + $0x48] sm:$0xff]  ;;  %v488_v60 = vld [vmem:[%s2516_s13 + $0x10] sm:$0xff]  ;;  %v1233_v63 = vld [vmem:[%s2534_s25 + $0x60] sm:$0xff]  ;;  %v1202_v24 = vand.u32 127, %v1201_v22 }
  0x56   : > { %v496_v61 = vld [vmem:[%s2516_s13 + $0x50] sm:$0xff]  ;;  %v1234_v62 = vld [vmem:[%s2534_s25 + $0x68] sm:$0xff]  ;;  %v489_v0 = vld [vmem:[%s2516_s13 + $0x18] sm:$0xff] }
  0x57   : > { %1275 = vperm.xlu0 %2298, %v1212_v26   ;;  %v497_v1 = vld [vmem:[%s2516_s13 + $0x58] sm:$0xff]  ;;  %v490_v2 = vld [vmem:[%s2516_s13 + $0x20] sm:$0xff]  ;;  %v1235_v5 = vld [vmem:[%s2534_s25 + $0x70] sm:$0xff] }
  0x58   : > { %1272 = vperm.xlu1 %2299, %v1211_v27   ;;  %v498_v3 = vld [vmem:[%s2516_s13 + $0x60] sm:$0xff]  ;;  %v1236_v4 = vld [vmem:[%s2534_s25 + $0x78] sm:$0xff]  ;;  %v491_v6 = vld [vmem:[%s2516_s13 + $0x28] sm:$0xff]  ;;  %v2873_v27 = vadd.s32 %v1203_v25, %v1202_v24 }
  0x59   : > { %2208 = vmatpush3.bf16.xpose.msk.msra.mxu0 %vm2705_vm2, %v2203_v14  ;;  %2249 = vmatpush3.bf16.xpose.msk.msra.mxu1 %vm2705_vm2, %v2203_v14  ;;  %v499_v7 = vld [vmem:[%s2516_s13 + $0x68] sm:$0xff]  ;;  %v492_v8 = vld [vmem:[%s2516_s13 + $0x30] sm:$0xff]  ;;  %v493_v10 = vld [vmem:[%s2516_s13 + $0x38] sm:$0xff] }
  0x5a   : > { %2211 = vmatprep.subr.msk.bf16.mxu0 %vm2705_vm2, %v2209_v21  ;;  %2242 = vmatprep.subr.msk.bf16.mxu1 %vm2705_vm2, %v2209_v21  ;;  %v500_v9 = vld [vmem:[%s2516_s13 + $0x70] sm:$0xff]  ;;  %v501_v11 = vld [vmem:[%s2516_s13 + $0x78] sm:$0xff]  ;;  %v2892_v32 = vld [vmem:[%s370_s15] ss:$0 sm:$0xff] }
  0x5b   : > { %1281 = vperm.xlu0 %2298, %v1214_v29  }
  0x5c   : > { %1278 = vperm.xlu1 %2299, %v1213_v30  }
  0x5f   : > { %1287 = vperm.xlu0 %2298, %v1216_v33  }
  0x60   : > { %1284 = vperm.xlu1 %2299, %v1215_v34  }
  0x61   : > { %2214 = vmatpush3.bf16.xpose.msk.msra.mxu0 %vm2705_vm2, %v2209_v21  ;;  %2250 = vmatpush3.bf16.xpose.msk.msra.mxu1 %vm2705_vm2, %v2209_v21 }
  0x62   : > { %2217 = vmatprep.subr.msk.bf16.mxu0 %vm2705_vm2, %v2215_v28  ;;  %2243 = vmatprep.subr.msk.bf16.mxu1 %vm2705_vm2, %v2215_v28 }
  0x63   : > { %1293 = vperm.xlu0 %2298, %v1218_v36  }
  0x64   : > { %1290 = vperm.xlu1 %2299, %v1217_v37  }
  0x67   : > { %1299 = vperm.xlu0 %2298, %v1220_v40  }
  0x68   : > { %1296 = vperm.xlu1 %2299, %v1219_v41  }
  0x69   : > { %2220 = vmatpush3.bf16.xpose.msk.msra.mxu0 %vm2705_vm2, %v2215_v28  ;;  %2251 = vmatpush3.bf16.xpose.msk.msra.mxu1 %vm2705_vm2, %v2215_v28 }
  0x6a   : > { %2223 = vmatprep.subr.msk.bf16.mxu0 %vm2705_vm2, %v2221_v35  ;;  %2244 = vmatprep.subr.msk.bf16.mxu1 %vm2705_vm2, %v2221_v35 }
  0x6b   : > { %1414 = vperm.xlu0 %2298, %v1221_v43  }
  0x6c   : > { %1417 = vperm.xlu1 %2299, %v1222_v44  }
  0x6f   : > { %1423 = vperm.xlu0 %2298, %v1224_v47  }
  0x70   : > { %1420 = vperm.xlu1 %2299, %v1223_v48  }
  0x71   : > { %2226 = vmatpush3.bf16.xpose.msk.msra.mxu0 %vm2705_vm2, %v2221_v35  ;;  %2252 = vmatpush3.bf16.xpose.msk.msra.mxu1 %vm2705_vm2, %v2221_v35 }
  0x72   : > { %2229 = vmatprep.subr.msk.bf16.mxu0 %vm2705_vm2, %v2227_v42  ;;  %2245 = vmatprep.subr.msk.bf16.mxu1 %vm2705_vm2, %v2227_v42 }
  0x73   : > { %1429 = vperm.xlu0 %2298, %v1226_v50  }
  0x74   : > { %1426 = vperm.xlu1 %2299, %v1225_v51  }
  0x77   : > { %1435 = vperm.xlu0 %2298, %v1228_v52  }
  0x78   : > { %1432 = vperm.xlu1 %2299, %v1227_v53  }
  0x79   : > { %2232 = vmatpush3.bf16.xpose.msk.msra.mxu0 %vm2705_vm2, %v2227_v42  ;;  %2253 = vmatpush3.bf16.xpose.msk.msra.mxu1 %vm2705_vm2, %v2227_v42 }
  0x7a   : > { %2235 = vmatprep.subr.msk.bf16.mxu0 %vm2705_vm2, %v2233_v49  ;;  %2246 = vmatprep.subr.msk.bf16.mxu1 %vm2705_vm2, %v2233_v49 }
  0x7b   : > { %1441 = vperm.xlu0 %2298, %v1230_v54  }
  0x7c   : > { %1438 = vperm.xlu1 %2299, %v1229_v55  }
  0x7f   : > { %1447 = vperm.xlu0 %2298, %v1232_v56  }
  0x80   : > { %1444 = vperm.xlu1 %2299, %v1231_v57  }
  0x81   : > { %2238 = vmatpush3.bf16.xpose.msk.msra.mxu0 %vm2705_vm2, %v2233_v49  ;;  %2254 = vmatpush3.bf16.xpose.msk.msra.mxu1 %vm2705_vm2, %v2233_v49 }
  0x83   : > { %1453 = vperm.xlu0 %2298, %v1234_v62  }
  0x84   : > { %1450 = vperm.xlu1 %2299, %v1233_v63  }
  0x87   : > { %1459 = vperm.xlu0 %2298, %v1236_v4  }
  0x88   : > { %2168 = vmatmul.mubr.msk.f32.vlgmr.msra.gmra.mrb[0].mxu0 %vm525_vm1, %v487_v58  ;;  %2180 = vmatmul.mubr.msk.f32.vlgmr.msra.gmra.mrb[0].mxu1 %vm525_vm1, %v495_v59 }
  0x89   : > { %2170 = vmatprep.mubr.msk.f32.mxu0 %vm525_vm1, %v488_v60  ;;  %2182 = vmatprep.mubr.msk.f32.mxu1 %vm525_vm1, %v496_v61 }
  0x8a   : > { %1456 = vperm.xlu1 %2299, %v1235_v5  }
  0x8c   : > { %2171 = vmatmul.mubr.msk.f32.gmra.mrb[2].mxu0 %vm525_vm1, %v489_v0  ;;  %2183 = vmatmul.mubr.msk.f32.gmra.mrb[2].mxu1 %vm525_vm1, %v497_v1 }
  0x8d   : > { %2173 = vmatprep.mubr.msk.f32.mxu0 %vm525_vm1, %v490_v2  ;;  %2185 = vmatprep.mubr.msk.f32.mxu1 %vm525_vm1, %v498_v3 }
  0x90   : > { %2174 = vmatmul.mubr.msk.f32.gmra.mrb[4].mxu0 %vm525_vm1, %v491_v6  ;;  %2186 = vmatmul.mubr.msk.f32.gmra.mrb[4].mxu1 %vm525_vm1, %v499_v7 }
  0x91   : > { %2176 = vmatprep.mubr.msk.f32.mxu0 %vm525_vm1, %v492_v8  ;;  %2188 = vmatprep.mubr.msk.f32.mxu1 %vm525_vm1, %v500_v9 }
  0x94   : > { %2177 = vmatmul.mubr.msk.f32.gmra.mrb[6].mxu0 %vm525_vm1, %v493_v10  ;;  %2189 = vmatmul.mubr.msk.f32.gmra.mrb[6].mxu1 %vm525_vm1, %v501_v11 }
  0xca   : > { %v2850_v12 = vpop.permute.xlu0 %1254 }
  0xcb   : > { %v1258_v31 = vpop.permute.xlu1 %1257  ;;  %vm1301_vm7 = vcmp.eq.s32.totalorder %v2873_v27, %v2850_v12 }
  0xcc   : > { %vm1302_vm8 = vcmp.eq.s32.totalorder %v2873_v27, %v1258_v31 }
  0xce   : > { %v2852_v13 = vpop.permute.xlu0 %1263 }
  0xcf   : > { %v2900_v39 = vpop.permute.xlu1 %1260  ;;  %vm1304_vm11 = vcmp.eq.s32.totalorder %v2873_v27, %v2852_v13 }
  0xd0   : > { %vm1303_vm12 = vcmp.eq.s32.totalorder %v2873_v27, %v2900_v39 }
  0xd2   : > { %v2854_v14 = vpop.permute.xlu0 %1269 }
  0xd3   : > { %v2912_v50 = vpop.permute.xlu1 %1266  ;;  %vm1306_vm15 = vcmp.eq.s32.totalorder %v2873_v27, %v2854_v14 }
  0xd4   : > { %vm1305_vm14 = vcmp.eq.s32.totalorder %v2873_v27, %v2912_v50 }
  0xd6   : > { %v2856_v15 = vpop.permute.xlu0 %1275 }
  0xd7   : > { %v2931_v60 = vpop.permute.xlu1 %1272 }
  0xd8   : > { %vm1307_vm2 = vcmp.eq.s32.totalorder %v2873_v27, %v2931_v60 }
  0xda   : > { %v1282_v16 = vpop.permute.xlu0 %1281 }
  0xdb   : > { %vm1310_vm6 = vcmp.eq.s32.totalorder %v2873_v27, %v1282_v16  ;;  %v1279_v63 = vpop.permute.xlu1 %1278 }
  0xdc   : > { %vm1309_vm9 = vcmp.eq.s32.totalorder %v2873_v27, %v1279_v63 }
  0xde   : > { %v2858_v17 = vpop.permute.xlu0 %1287 }
  0xdf   : > { %vm1312_vm10 = vcmp.eq.s32.totalorder %v2873_v27, %v2858_v17  ;;  %v1285_v5 = vpop.permute.xlu1 %1284 }
  0xe0   : > { %vm1311_vm13 = vcmp.eq.s32.totalorder %v2873_v27, %v1285_v5  ;;  %v3115_v5 = vld [vmem:[#allocation2 + $0x10] sm:$0xff] }
  0xe2   : > { %v2860_v18 = vpop.permute.xlu0 %1293 }
  0xe3   : > { %v1291_v16 = vpop.permute.xlu1 %1290  ;;  %vm1314_vm1 = vcmp.eq.s32.totalorder %v2873_v27, %v2860_v18 }
  0xe4   : > { %vm1313_vm0 = vcmp.eq.s32.totalorder %v2873_v27, %v1291_v16  ;;  %v1246_v16 = vld [vmem:[#allocation4 + $0x48] sm:$0xff] }
  0xe6   : > { %v2862_v19 = vpop.permute.xlu0 %1299 }
  0xe7   : > { %v1297_v31 = vpop.permute.xlu1 %1296 }
  0xea   : > { %v2864_v20 = vpop.permute.xlu0 %1414 }
  0xee   : > { %v2866_v21 = vpop.permute.xlu0 %1423 }
  0xf2   : > { %v2869_v23 = vpop.permute.xlu0 %1429 }
  0xf6   : > { %v2871_v26 = vpop.permute.xlu0 %1435 }
  0xfa   : > { %v2875_v28 = vpop.permute.xlu0 %1441 }
  0xfb   : > { %vm1470_vm3 = vcmp.eq.s32.totalorder %v2873_v27, %v2875_v28 }
  0xfe   : > { %v2879_v29 = vpop.permute.xlu0 %1447 }
  0xff   : > { %vm1472_vm4 = vcmp.eq.s32.totalorder %v2873_v27, %v2879_v29 }
 0x102   : > { %v2883_v30 = vpop.permute.xlu0 %1453 }
 0x103   : > { %vm1474_vm5 = vcmp.eq.s32.totalorder %v2873_v27, %v2883_v30 }
 0x15b   : > { %v2169_v33 = vpop.f32.mrb[0].mxu0  ;;  %v2181_v34 = vpop.f32.mrb[0].mxu1 }
 0x15c   : > { %v2895_v35 = vadd.f32 %v2169_v33, %v2892_v32  ;;  %v2898_v36 = vadd.f32 %v2181_v34, %v2892_v32  ;;  %v688_v37 = vpop.f32.mrb[1].mxu0  ;;  %v728_v38 = vpop.f32.mrb[1].mxu1 }
 0x15d   : > { %v2905_v42 = vadd.f32 %v2892_v32, %v688_v37  ;;  %v2910_v47 = vadd.f32 %v2892_v32, %v728_v38  ;;  %v3019_v33 = vpop.permute.xlu1 %1417 }
 0x15e   : > { %785 = vmax.xlane.f32.xlu1 %v2898_v36  ;;  %769 = vmax.xlane.f32.xlu0 %v2895_v35  ;;  %v1326_v59 = vsel %vm1310_vm6, %v2898_v36, 0.0  ;;  %v1318_v0 = vsel %vm1302_vm8, %v2895_v35, 0.0  ;;  %vm1308_vm6 = vcmp.eq.s32.totalorder %v2873_v27, %v2856_v15  ;;  %vm1087_vm8 = vcmask 7168  }
 0x15f   : > { %v2172_v40 = vpop.f32.mrb[2].mxu0  ;;  %v2184_v41 = vpop.f32.mrb[2].mxu1  ;;  %v1317_v61 = vsel %vm1301_vm7, %v2905_v42, 0.0  ;;  %v1325_v2 = vsel %vm1309_vm9, %v2910_v47, 0.0  ;;  %vm1315_vm7 = vcmp.eq.s32.totalorder %v2873_v27, %v1297_v31  ;;  %v1128_v31 = vld [vmem:[#allocation6 + $0x40] sm:$0xff]  ;;  %vm1461_vm9 = vcmp.eq.s32.totalorder %v2873_v27, %v2864_v20 }
 0x160   : > { %v738_v43 = vpop.f32.mrb[3].mxu1  ;;  %v698_v44 = vpop.f32.mrb[3].mxu0  ;;  %v2939_v62 = vadd.f32 %v2172_v40, %v2892_v32  ;;  %v2945_v1 = vadd.f32 %v2184_v41, %v2892_v32 }
 0x161   : > { %v2950_v3 = vadd.f32 %v2892_v32, %v738_v43  ;;  %v2955_v4 = vadd.f32 %v2892_v32, %v698_v44  ;;  %v3021_v34 = vpop.permute.xlu1 %1420  ;;  %v3033_v41 = vpop.permute.xlu0 %1459  ;;  %v3037_v44 = vld [vmem:[#allocation2 + $0x48] sm:$0xff] }
 0x162   : > { %1138 = vadd.xlane.f32.xlu1 %v2895_v35  ;;  %767 = vmax.xlane.f32.xlu0 %v2905_v42  ;;  %v1328_v6 = vsel %vm1312_vm10, %v2945_v1, 0.0  ;;  %v1320_v7 = vsel %vm1304_vm11, %v2939_v62, 0.0  ;;  %vm1463_vm10 = vcmp.eq.s32.totalorder %v2873_v27, %v3021_v34 }
 0x163   : > { %v2175_v45 = vpop.f32.mrb[4].mxu0  ;;  %v2187_v46 = vpop.f32.mrb[4].mxu1  ;;  %v1319_v8 = vsel %vm1303_vm12, %v2955_v4, 0.0  ;;  %v1327_v9 = vsel %vm1311_vm13, %v2950_v3, 0.0  ;;  %vm1316_vm12 = vcmp.eq.s32.totalorder %v2873_v27, %v2862_v19  ;;  %vm1462_vm13 = vcmp.eq.s32.totalorder %v2873_v27, %v3019_v33 }
 0x164   : > { %v748_v48 = vpop.f32.mrb[5].mxu1  ;;  %v708_v49 = vpop.f32.mrb[5].mxu0  ;;  %v2973_v10 = vadd.f32 %v2175_v45, %v2892_v32  ;;  %v2981_v12 = vadd.f32 %v2187_v46, %v2892_v32  ;;  %v3039_v45 = vld [vmem:[#allocation2 + $0x8] sm:$0xff]  ;;  %v1478_v19 = vsel %vm1462_vm13, %v2895_v35, 0.0 }
 0x165   : > { %v2976_v11 = vadd.f32 %v2892_v32, %v708_v49  ;;  %v2984_v13 = vadd.f32 %v2892_v32, %v748_v48  ;;  %v3023_v37 = vpop.permute.xlu1 %1426 }
 0x166   : > { %1154 = vadd.xlane.f32.xlu1 %v2898_v36  ;;  %783 = vmax.xlane.f32.xlu0 %v2910_v47  ;;  %v1322_v22 = vsel %vm1306_vm15, %v2973_v10, 0.0  ;;  %v1330_v25 = vsel %vm1314_vm1, %v2981_v12, 0.0  ;;  %vm1465_vm11 = vcmp.eq.s32.totalorder %v2873_v27, %v3023_v37  ;;  %v1490_v28 = vsel %vm1474_vm5, %v2981_v12, 0.0 }
 0x167   : > { %v2178_v51 = vpop.f32.mrb[6].mxu0  ;;  %v2190_v52 = vpop.f32.mrb[6].mxu1  ;;  %v1321_v17 = vsel %vm1305_vm14, %v2976_v11, 0.0  ;;  %v1329_v24 = vsel %vm1313_vm0, %v2984_v13, 0.0  ;;  %vm1464_vm0 = vcmp.eq.s32.totalorder %v2873_v27, %v2866_v21 }
 0x168   : > { %v2917_v53 = vadd.f32 %v2178_v51, %v2892_v32  ;;  %v2920_v54 = vadd.f32 %v2190_v52, %v2892_v32  ;;  %v718_v55 = vpop.f32.mrb[7].mxu0  ;;  %v758_v56 = vpop.f32.mrb[7].mxu1  ;;  %v1121_v51 = vld [vmem:[#allocation6 + $0x8] sm:$0xff]  ;;  %v3047_v52 = vld [vmem:[#allocation2] sm:$0xff]  ;;  %v1480_v33 = vsel %vm1464_vm0, %v2939_v62, 0.0 }
 0x169   : > { %v2924_v57 = vadd.f32 %v2892_v32, %v718_v55  ;;  %v2927_v58 = vadd.f32 %v2892_v32, %v758_v56  ;;  %v3025_v38 = vpop.permute.xlu1 %1432  ;;  %v1240_v55 = vld [vmem:[#allocation4 + $0x18] sm:$0xff]  ;;  %v3133_v56 = vld [vmem:[#allocation2 + $0x28] sm:$0xff] }
 0x16a   : > { %1351 = vadd.xlane.f32.xlu1 %v1326_v59  ;;  %1136 = vadd.xlane.f32.xlu0 %v2905_v42  ;;  %v1324_v18 = vsel %vm1308_vm6, %v2917_v53, 0.0  ;;  %3778 = vst [vmem:[#allocation10_spill] sm:$0xff] %v3133_v56  ;;  %v1332_v20 = vsel %vm1316_vm12, %v2920_v54, 0.0  ;;  %vm1467_vm14 = vcmp.eq.s32.totalorder %v2873_v27, %v3025_v38 }
 0x16b   : > { %v1323_v14 = vsel %vm1307_vm2, %v2924_v57, 0.0  ;;  %v1331_v32 = vsel %vm1315_vm7, %v2927_v58, 0.0  ;;  %v1483_v34 = vsel %vm1467_vm14, %v2924_v57, 0.0  ;;  %vm1466_vm2 = vcmp.eq.s32.totalorder %v2873_v27, %v2869_v23 }
 0x16c   : > { %vm1468_vm7 = vcmp.eq.s32.totalorder %v2873_v27, %v2871_v26 }
 0x16d   : > { %v3027_v15 = vpop.permute.xlu1 %1438 }
 0x16e   : > { %1152 = vadd.xlane.f32.xlu0 %v2910_v47  ;;  %1333 = vadd.xlane.f32.xlu1 %v1317_v61  ;;  %vm1469_vm15 = vcmp.eq.s32.totalorder %v2873_v27, %v3027_v15 }
 0x16f   : > { %v1485_v37 = vsel %vm1469_vm15, %v2910_v47, 0.0 }
 0x171   : > { %v3029_v39 = vpop.permute.xlu1 %1444 }
 0x172   : > { %1335 = vadd.xlane.f32.xlu0 %v1318_v0  ;;  %773 = vmax.xlane.f32.xlu1 %v2939_v62  ;;  %v1129_v0 = vld [vmem:[#allocation6 + $0x48] sm:$0xff]  ;;  %vm1471_vm1 = vcmp.eq.s32.totalorder %v2873_v27, %v3029_v39 }
 0x173   : > { %v1487_v38 = vsel %vm1471_vm1, %v2950_v3, 0.0 }
 0x175   : > { %v3031_v40 = vpop.permute.xlu1 %1450 }
 0x176   : > { %1349 = vadd.xlane.f32.xlu0 %v1325_v2  ;;  %789 = vmax.xlane.f32.xlu1 %v2945_v1  ;;  %v3062_v2 = vld [vmem:[#allocation2 + $0x40] sm:$0xff]  ;;  %vm1473_vm6 = vcmp.eq.s32.totalorder %v2873_v27, %v3031_v40  ;;  %v1484_v40 = vsel %vm1468_vm7, %v2917_v53, 0.0 }
 0x177   : > { %v1489_v23 = vsel %vm1473_vm6, %v2984_v13, 0.0 }
 0x179   : > { %v3035_v43 = vpop.permute.xlu1 %1456 }
 0x17a   : > { %787 = vmax.xlane.f32.xlu0 %v2950_v3  ;;  %1142 = vadd.xlane.f32.xlu1 %v2939_v62 }
 0x17e   : > { %1140 = vadd.xlane.f32.xlu0 %v2955_v4  ;;  %1158 = vadd.xlane.f32.xlu1 %v2945_v1 }
 0x182   : > { %1156 = vadd.xlane.f32.xlu0 %v2950_v3  ;;  %771 = vmax.xlane.f32.xlu1 %v2955_v4 }
 0x186   : > { %1355 = vadd.xlane.f32.xlu0 %v1328_v6  ;;  %1339 = vadd.xlane.f32.xlu1 %v1320_v7 }
 0x18a   : > { %1337 = vadd.xlane.f32.xlu0 %v1319_v8  ;;  %1353 = vadd.xlane.f32.xlu1 %v1327_v9 }
 0x18e   : > { %775 = vmax.xlane.f32.xlu0 %v2976_v11  ;;  %777 = vmax.xlane.f32.xlu1 %v2973_v10 }
 0x192   : > { %791 = vmax.xlane.f32.xlu0 %v2984_v13  ;;  %793 = vmax.xlane.f32.xlu1 %v2981_v12 }
 0x196   : > { %1144 = vadd.xlane.f32.xlu0 %v2976_v11  ;;  %1146 = vadd.xlane.f32.xlu1 %v2973_v10 }
 0x19a   : > { %1160 = vadd.xlane.f32.xlu0 %v2984_v13  ;;  %1162 = vadd.xlane.f32.xlu1 %v2981_v12 }
 0x19e   : > { %1341 = vadd.xlane.f32.xlu0 %v1321_v17  ;;  %1343 = vadd.xlane.f32.xlu1 %v1322_v22  ;;  %v1120_v17 = vld [vmem:[#allocation6] sm:$0xff]  ;;  %v1248_v22 = vld [vmem:[#allocation4 + $0x58] sm:$0xff] }
 0x1a2   : > { %1357 = vadd.xlane.f32.xlu0 %v1329_v24  ;;  %1359 = vadd.xlane.f32.xlu1 %v1330_v25 }
 0x1a6   : > { %779 = vmax.xlane.f32.xlu0 %v2924_v57  ;;  %781 = vmax.xlane.f32.xlu1 %v2917_v53 }
 0x1aa   : > { %795 = vmax.xlane.f32.xlu0 %v2927_v58  ;;  %797 = vmax.xlane.f32.xlu1 %v2920_v54 }
 0x1ae   : > { %1148 = vadd.xlane.f32.xlu0 %v2924_v57  ;;  %1150 = vadd.xlane.f32.xlu1 %v2917_v53 }
 0x1b2   : > { %1164 = vadd.xlane.f32.xlu0 %v2927_v58  ;;  %1166 = vadd.xlane.f32.xlu1 %v2920_v54 }
 0x1b6   : > { %1345 = vadd.xlane.f32.xlu0 %v1323_v14  ;;  %1347 = vadd.xlane.f32.xlu1 %v1324_v18 }
 0x1ba   : > { %1361 = vadd.xlane.f32.xlu0 %v1331_v32  ;;  %v1237_v32 = vld [vmem:[#allocation4] sm:$0xff] }
 0x1eb   : > { %v786_v46 = vpop.xlane.xlu1 %785  ;;  %v770_v48 = vpop.xlane.xlu0 %769 }
 0x1ec   : > { %v3042_v49 = vmax.f32 %v3037_v44, %v786_v46  ;;  %v3045_v50 = vmax.f32 %v3039_v45, %v770_v48 }
 0x1ee   : > { %1113 = vst.msk [vmem:[#allocation2 + $0x48] sm:$0xff] %vm1087_vm8, %v3042_v49  ;;  %1105 = vst.msk [vmem:[#allocation2 + $0x8] sm:$0xff] %vm1087_vm8, %v3045_v50  ;;  %958 = vperm.xlu0 %2298, %v3042_v49   ;;  %918 = vperm.xlu1 %2299, %v3045_v50  }
 0x1ef   : > { %v1139_v59 = vpop.xlane.xlu1 %1138  ;;  %v768_v60 = vpop.xlane.xlu0 %767 }
 0x1f0   : > { %v1169_v61 = vadd.f32 %v1139_v59, %v1121_v51  ;;  %v3060_v63 = vmax.f32 %v3047_v52, %v768_v60  ;;  %v1238_v60 = vld [vmem:[#allocation4 + $0x8] sm:$0xff] }
 0x1f2   : > { %1185 = vst.msk [vmem:[#allocation6 + $0x8] sm:$0xff] %vm1087_vm8, %v1169_v61  ;;  %1104 = vst.msk [vmem:[#allocation2] sm:$0xff] %vm1087_vm8, %v3060_v63  ;;  %913 = vperm.xlu0 %2298, %v3060_v63   ;;  %v3081_v61 = vld [vmem:[#allocation2 + $0x18] sm:$0xff] }
 0x1f3   : > { %v1155_v6 = vpop.xlane.xlu1 %1154  ;;  %v784_v7 = vpop.xlane.xlu0 %783 }
 0x1f4   : > { %v1177_v8 = vadd.f32 %v1155_v6, %v1129_v0  ;;  %v3071_v9 = vmax.f32 %v3062_v2, %v784_v7 }
 0x1f6   : > { %1193 = vst.msk [vmem:[#allocation6 + $0x48] sm:$0xff] %vm1087_vm8, %v1177_v8  ;;  %1112 = vst.msk [vmem:[#allocation2 + $0x40] sm:$0xff] %vm1087_vm8, %v3071_v9  ;;  %953 = vperm.xlu1 %2299, %v3071_v9  }
 0x1f7   : > { %v1352_v24 = vpop.xlane.xlu1 %1351  ;;  %v1137_v25 = vpop.xlane.xlu0 %1136 }
 0x1f8   : > { %v1374_v14 = vadd.f32 %v1352_v24, %v1246_v16  ;;  %v1168_v18 = vadd.f32 %v1137_v25, %v1120_v17  ;;  %v1245_v16 = vld [vmem:[#allocation4 + $0x40] sm:$0xff]  ;;  %v3088_v17 = vld [vmem:[#allocation2 + $0x58] sm:$0xff]  ;;  %v1130_v24 = vld [vmem:[#allocation6 + $0x50] sm:$0xff] }
 0x1fa   : > { %1390 = vst.msk [vmem:[#allocation4 + $0x48] sm:$0xff] %vm1087_vm8, %v1374_v14  ;;  %1184 = vst.msk [vmem:[#allocation6] sm:$0xff] %vm1087_vm8, %v1168_v18 }
 0x1fb   : > { %v1153_v46 = vpop.xlane.xlu0 %1152  ;;  %v1334_v48 = vpop.xlane.xlu1 %1333 }
 0x1fc   : > { %v1176_v51 = vadd.f32 %v1153_v46, %v1128_v31  ;;  %v1365_v59 = vadd.f32 %v1334_v48, %v1237_v32  ;;  %v3099_v32 = vld [vmem:[#allocation2 + $0x50] sm:$0xff]  ;;  %v1123_v46 = vld [vmem:[#allocation6 + $0x18] sm:$0xff] }
 0x1fd   : > { %3775 = vst [vmem:[#allocation7_spill] sm:$0xff] %v3099_v32 }
 0x1fe   : > { %1192 = vst.msk [vmem:[#allocation6 + $0x40] sm:$0xff] %vm1087_vm8, %v1176_v51  ;;  %1381 = vst.msk [vmem:[#allocation4] sm:$0xff] %vm1087_vm8, %v1365_v59 }
 0x1ff   : > { %v1336_v0 = vpop.xlane.xlu0 %1335  ;;  %v774_v6 = vpop.xlane.xlu1 %773 }
 0x200   : > { %v1366_v7 = vadd.f32 %v1336_v0, %v1238_v60  ;;  %v3086_v8 = vmax.f32 %v3081_v61, %v774_v6  ;;  %v1122_v6 = vld [vmem:[#allocation6 + $0x10] sm:$0xff] }
 0x202   : > { %1382 = vst.msk [vmem:[#allocation4 + $0x8] sm:$0xff] %vm1087_vm8, %v1366_v7  ;;  %1107 = vst.msk [vmem:[#allocation2 + $0x18] sm:$0xff] %vm1087_vm8, %v3086_v8  ;;  %928 = vperm.xlu1 %2299, %v3086_v8   ;;  %v1131_v7 = vld [vmem:[#allocation6 + $0x58] sm:$0xff] }
 0x203   : > { %v1350_v25 = vpop.xlane.xlu0 %1349  ;;  %v790_v14 = vpop.xlane.xlu1 %789 }
 0x204   : > { %v1373_v18 = vadd.f32 %v1350_v25, %v1245_v16  ;;  %v3097_v31 = vmax.f32 %v3088_v17, %v790_v14 }
 0x206   : > { %1389 = vst.msk [vmem:[#allocation4 + $0x40] sm:$0xff] %vm1087_vm8, %v1373_v18  ;;  %1115 = vst.msk [vmem:[#allocation2 + $0x58] sm:$0xff] %vm1087_vm8, %v3097_v31  ;;  %968 = vperm.xlu0 %2298, %v3097_v31  }
 0x207   : > { %v788_v51 = vpop.xlane.xlu0 %787  ;;  %v1143_v59 = vpop.xlane.xlu1 %1142 }
 0x208   : > { %v3108_v60 = vmax.f32 %v3099_v32, %v788_v51  ;;  %v1171_v0 = vadd.f32 %v1143_v59, %v1123_v46  ;;  %v1241_v32 = vld [vmem:[#allocation4 + $0x20] sm:$0xff] }
 0x20a   : > { %3776 = vst [vmem:[#allocation8_spill] sm:$0xff] %v3108_v60  ;;  %1114 = vst.msk [vmem:[#allocation2 + $0x50] sm:$0xff] %vm1087_vm8, %v3108_v60 }
 0x20b   : > { %1187 = vst.msk [vmem:[#allocation6 + $0x18] sm:$0xff] %vm1087_vm8, %v1171_v0  ;;  %v1141_v25 = vpop.xlane.xlu0 %1140  ;;  %v1159_v14 = vpop.xlane.xlu1 %1158  ;;  %v3131_v0 = vld [vmem:[#allocation2 + $0x20] sm:$0xff] }
 0x20c   : > { %v1170_v18 = vadd.f32 %v1141_v25, %v1122_v6  ;;  %v1179_v48 = vadd.f32 %v1159_v14, %v1131_v7  ;;  %v1247_v14 = vld [vmem:[#allocation4 + $0x50] sm:$0xff]  ;;  %3777 = vst [vmem:[#allocation9_spill] sm:$0xff] %v3131_v0 }
 0x20e   : > { %1186 = vst.msk [vmem:[#allocation6 + $0x10] sm:$0xff] %vm1087_vm8, %v1170_v18  ;;  %1195 = vst.msk [vmem:[#allocation6 + $0x58] sm:$0xff] %vm1087_vm8, %v1179_v48 }
 0x20f   : > { %v1157_v46 = vpop.xlane.xlu0 %1156  ;;  %v772_v51 = vpop.xlane.xlu1 %771 }
 0x210   : > { %v1178_v59 = vadd.f32 %v1157_v46, %v1130_v24  ;;  %v3120_v16 = vmax.f32 %v3115_v5, %v772_v51  ;;  %v1239_v24 = vld [vmem:[#allocation4 + $0x10] sm:$0xff] }
 0x212   : > { %1194 = vst.msk [vmem:[#allocation6 + $0x50] sm:$0xff] %vm1087_vm8, %v1178_v59  ;;  %1106 = vst.msk [vmem:[#allocation2 + $0x10] sm:$0xff] %vm1087_vm8, %v3120_v16  ;;  %923 = vperm.xlu1 %2299, %v3120_v16  }
 0x213   : > { %v1356_v6 = vpop.xlane.xlu0 %1355  ;;  %v1340_v48 = vpop.xlane.xlu1 %1339 }
 0x214   : > { %v1376_v7 = vadd.f32 %v1356_v6, %v1248_v22  ;;  %v1368_v25 = vadd.f32 %v1340_v48, %v1240_v55 }
 0x216   : > { %1392 = vst.msk [vmem:[#allocation4 + $0x58] sm:$0xff] %vm1087_vm8, %v1376_v7  ;;  %1384 = vst.msk [vmem:[#allocation4 + $0x18] sm:$0xff] %vm1087_vm8, %v1368_v25  ;;  %963 = vperm.xlu1 %2299, %v3108_v60   ;;  %v3143_v7 = vld [vmem:[#allocation2 + $0x60] sm:$0xff]  ;;  %v3145_v25 = vld [vmem:[#allocation2 + $0x68] sm:$0xff] }
 0x217   : > { %v1338_v18 = vpop.xlane.xlu0 %1337  ;;  %v1354_v46 = vpop.xlane.xlu1 %1353  ;;  %3781 = vst [vmem:[#allocation13_spill] sm:$0xff] %v3143_v7  ;;  %3782 = vst [vmem:[#allocation14_spill] sm:$0xff] %v3145_v25  ;;  %v1133_v60 = vld [vmem:[#allocation6 + $0x68] sm:$0xff] }
 0x218   : > { %v1367_v51 = vadd.f32 %v1338_v18, %v1239_v24  ;;  %v1375_v59 = vadd.f32 %v1354_v46, %v1247_v14 }
 0x21a   : > { %1383 = vst.msk [vmem:[#allocation4 + $0x10] sm:$0xff] %vm1087_vm8, %v1367_v51  ;;  %1391 = vst.msk [vmem:[#allocation4 + $0x50] sm:$0xff] %vm1087_vm8, %v1375_v59 }
 0x21b   : > { %v776_v55 = vpop.xlane.xlu0 %775  ;;  %v778_v22 = vpop.xlane.xlu1 %777 }
 0x21c   : > { %v3138_v6 = vmax.f32 %v3131_v0, %v776_v55  ;;  %v3141_v48 = vmax.f32 %v3133_v56, %v778_v22  ;;  %v1124_v55 = vld [vmem:[#allocation6 + $0x20] sm:$0xff]  ;;  %v1125_v22 = vld [vmem:[#allocation6 + $0x28] sm:$0xff] }
 0x21d   : > { %v1132_v56 = vld [vmem:[#allocation6 + $0x60] sm:$0xff] }
 0x21e   : > { %3779 = vst [vmem:[#allocation11_spill] sm:$0xff] %v3138_v6  ;;  %3780 = vst [vmem:[#allocation12_spill] sm:$0xff] %v3141_v48  ;;  %938 = vperm.xlu1 %2299, %v3141_v48  }
 0x21f   : > { %1108 = vst.msk [vmem:[#allocation2 + $0x20] sm:$0xff] %vm1087_vm8, %v3138_v6  ;;  %1109 = vst.msk [vmem:[#allocation2 + $0x28] sm:$0xff] %vm1087_vm8, %v3141_v48  ;;  %v792_v18 = vpop.xlane.xlu0 %791  ;;  %v794_v46 = vpop.xlane.xlu1 %793 }
 0x220   : > { %v3157_v51 = vmax.f32 %v3143_v7, %v792_v18  ;;  %v3160_v59 = vmax.f32 %v3145_v25, %v794_v46 }
 0x222   : > { %3783 = vst [vmem:[#allocation15_spill] sm:$0xff] %v3157_v51  ;;  %3784 = vst [vmem:[#allocation16_spill] sm:$0xff] %v3160_v59  ;;  %933 = vperm.xlu1 %2299, %v3138_v6   ;;  %978 = vperm.xlu0 %2298, %v3160_v59   ;;  %v1242_v6 = vld [vmem:[#allocation4 + $0x28] sm:$0xff] }
 0x223   : > { %1116 = vst.msk [vmem:[#allocation2 + $0x60] sm:$0xff] %vm1087_vm8, %v3157_v51  ;;  %1117 = vst.msk [vmem:[#allocation2 + $0x68] sm:$0xff] %vm1087_vm8, %v3160_v59  ;;  %v1145_v18 = vpop.xlane.xlu0 %1144  ;;  %v1147_v46 = vpop.xlane.xlu1 %1146  ;;  %v1249_v59 = vld [vmem:[#allocation4 + $0x60] sm:$0xff] }
 0x224   : > { %v1172_v0 = vadd.f32 %v1145_v18, %v1124_v55  ;;  %v1173_v48 = vadd.f32 %v1147_v46, %v1125_v22 }
 0x226   : > { %1188 = vst.msk [vmem:[#allocation6 + $0x20] sm:$0xff] %vm1087_vm8, %v1172_v0  ;;  %1189 = vst.msk [vmem:[#allocation6 + $0x28] sm:$0xff] %vm1087_vm8, %v1173_v48  ;;  %973 = vperm.xlu1 %2299, %v3157_v51   ;;  %v1250_v0 = vld [vmem:[#allocation4 + $0x68] sm:$0xff] }
 0x227   : > { %v1161_v24 = vpop.xlane.xlu0 %1160  ;;  %v1163_v14 = vpop.xlane.xlu1 %1162 }
 0x228   : > { %v1180_v7 = vadd.f32 %v1161_v24, %v1132_v56  ;;  %v1181_v25 = vadd.f32 %v1163_v14, %v1133_v60  ;;  %v3179_v24 = vld [vmem:[#allocation2 + $0x30] sm:$0xff]  ;;  %v3181_v14 = vld [vmem:[#allocation2 + $0x38] sm:$0xff] }
 0x229   : > { %3785 = vst [vmem:[#allocation17_spill] sm:$0xff] %v3179_v24  ;;  %3786 = vst [vmem:[#allocation18_spill] sm:$0xff] %v3181_v14 }
 0x22a   : > { %1196 = vst.msk [vmem:[#allocation6 + $0x60] sm:$0xff] %vm1087_vm8, %v1180_v7  ;;  %1197 = vst.msk [vmem:[#allocation6 + $0x68] sm:$0xff] %vm1087_vm8, %v1181_v25 }
 0x22b   : > { %v1342_v55 = vpop.xlane.xlu0 %1341  ;;  %v1344_v22 = vpop.xlane.xlu1 %1343 }
 0x22c   : > { %v1369_v18 = vadd.f32 %v1342_v55, %v1241_v32  ;;  %v1370_v46 = vadd.f32 %v1344_v22, %v1242_v6  ;;  %v3191_v55 = vld [vmem:[#allocation2 + $0x70] sm:$0xff] }
 0x22d   : > { %3789 = vst [vmem:[#allocation21_spill] sm:$0xff] %v3191_v55 }
 0x22e   : > { %1385 = vst.msk [vmem:[#allocation4 + $0x20] sm:$0xff] %vm1087_vm8, %v1369_v18  ;;  %1386 = vst.msk [vmem:[#allocation4 + $0x28] sm:$0xff] %vm1087_vm8, %v1370_v46 }
 0x22f   : > { %v1358_v48 = vpop.xlane.xlu0 %1357  ;;  %v1360_v51 = vpop.xlane.xlu1 %1359 }
 0x230   : > { %v1377_v56 = vadd.f32 %v1358_v48, %v1249_v59  ;;  %v1378_v60 = vadd.f32 %v1360_v51, %v1250_v0  ;;  %v3193_v59 = vld [vmem:[#allocation2 + $0x78] sm:$0xff] }
 0x231   : > { %3790 = vst [vmem:[#allocation22_spill] sm:$0xff] %v3193_v59 }
 0x232   : > { %1393 = vst.msk [vmem:[#allocation4 + $0x60] sm:$0xff] %vm1087_vm8, %v1377_v56  ;;  %1394 = vst.msk [vmem:[#allocation4 + $0x68] sm:$0xff] %vm1087_vm8, %v1378_v60  ;;  %v1126_v56 = vld [vmem:[#allocation6 + $0x30] sm:$0xff]  ;;  %v1127_v60 = vld [vmem:[#allocation6 + $0x38] sm:$0xff] }
 0x233   : > { %v780_v32 = vpop.xlane.xlu0 %779  ;;  %v782_v6 = vpop.xlane.xlu1 %781 }
 0x234   : > { %v3186_v7 = vmax.f32 %v3179_v24, %v780_v32  ;;  %v3189_v25 = vmax.f32 %v3181_v14, %v782_v6  ;;  %v1134_v24 = vld [vmem:[#allocation6 + $0x70] sm:$0xff] }
 0x235   : > { %v1243_v14 = vld [vmem:[#allocation4 + $0x30] sm:$0xff] }
 0x236   : > { %3787 = vst [vmem:[#allocation19_spill] sm:$0xff] %v3186_v7  ;;  %3788 = vst [vmem:[#allocation20_spill] sm:$0xff] %v3189_v25  ;;  %948 = vperm.xlu1 %2299, %v3189_v25  }
 0x237   : > { %1110 = vst.msk [vmem:[#allocation2 + $0x30] sm:$0xff] %vm1087_vm8, %v3186_v7  ;;  %1111 = vst.msk [vmem:[#allocation2 + $0x38] sm:$0xff] %vm1087_vm8, %v3189_v25  ;;  %v796_v18 = vpop.xlane.xlu0 %795  ;;  %v798_v46 = vpop.xlane.xlu1 %797  ;;  %v1135_v25 = vld [vmem:[#allocation6 + $0x78] sm:$0xff] }
 0x238   : > { %v3205_v0 = vmax.f32 %v3191_v55, %v796_v18  ;;  %v3208_v48 = vmax.f32 %v3193_v59, %v798_v46 }
 0x23a   : > { %3791 = vst [vmem:[#allocation23_spill] sm:$0xff] %v3208_v48  ;;  %1118 = vst.msk [vmem:[#allocation2 + $0x70] sm:$0xff] %vm1087_vm8, %v3205_v0  ;;  %943 = vperm.xlu1 %2299, %v3186_v7   ;;  %988 = vperm.xlu0 %2298, %v3208_v48   ;;  %v1244_v7 = vld [vmem:[#allocation4 + $0x38] sm:$0xff] }
 0x23b   : > { %1119 = vst.msk [vmem:[#allocation2 + $0x78] sm:$0xff] %vm1087_vm8, %v3208_v48  ;;  %v1149_v18 = vpop.xlane.xlu0 %1148  ;;  %v1151_v46 = vpop.xlane.xlu1 %1150  ;;  %v1251_v48 = vld [vmem:[#allocation4 + $0x70] sm:$0xff] }
 0x23c   : > { %v1174_v51 = vadd.f32 %v1149_v18, %v1126_v56  ;;  %v1175_v22 = vadd.f32 %v1151_v46, %v1127_v60 }
 0x23e   : > { %1190 = vst.msk [vmem:[#allocation6 + $0x30] sm:$0xff] %vm1087_vm8, %v1174_v51  ;;  %1191 = vst.msk [vmem:[#allocation6 + $0x38] sm:$0xff] %vm1087_vm8, %v1175_v22  ;;  %983 = vperm.xlu1 %2299, %v3205_v0  }
 0x23f   : > { %v1165_v32 = vpop.xlane.xlu0 %1164  ;;  %v1167_v6 = vpop.xlane.xlu1 %1166 }
 0x240   : > { %v1182_v55 = vadd.f32 %v1165_v32, %v1134_v24  ;;  %v1183_v59 = vadd.f32 %v1167_v6, %v1135_v25  ;;  %v1477_v24 = vsel %vm1461_vm9, %v2905_v42, 0.0  ;;  %v1482_v25 = vsel %vm1466_vm2, %v2973_v10, 0.0 }
 0x242   : > { %1198 = vst.msk [vmem:[#allocation6 + $0x70] sm:$0xff] %vm1087_vm8, %v1182_v55  ;;  %1199 = vst.msk [vmem:[#allocation6 + $0x78] sm:$0xff] %vm1087_vm8, %v1183_v59 }
 0x243   : > { %v1346_v56 = vpop.xlane.xlu0 %1345  ;;  %v1348_v60 = vpop.xlane.xlu1 %1347 }
 0x244   : > { %v1371_v18 = vadd.f32 %v1346_v56, %v1243_v14  ;;  %v1372_v46 = vadd.f32 %v1348_v60, %v1244_v7  ;;  %v1479_v14 = vsel %vm1463_vm10, %v2955_v4, 0.0  ;;  %v1481_v7 = vsel %vm1465_vm11, %v2976_v11, 0.0 }
 0x246   : > { %1387 = vst.msk [vmem:[#allocation4 + $0x30] sm:$0xff] %vm1087_vm8, %v1371_v18  ;;  %1388 = vst.msk [vmem:[#allocation4 + $0x38] sm:$0xff] %vm1087_vm8, %v1372_v46  ;;  %v1488_v46 = vsel %vm1472_vm4, %v2945_v1, 0.0  ;;  %vm1475_vm4 = vcmp.eq.s32.totalorder %v2873_v27, %v3035_v43 }
 0x247   : > { %v1362_v51 = vpop.xlane.xlu0 %1361 }
 0x248   : > { %v1379_v22 = vadd.f32 %v1362_v51, %v1251_v48 }
 0x24a   : > { %1395 = vst.msk [vmem:[#allocation4 + $0x70] sm:$0xff] %vm1087_vm8, %v1379_v22 }
 0x259   : > { %1493 = vadd.xlane.f32.xlu0 %v1477_v24 }
 0x25d   : > { %1497 = vadd.xlane.f32.xlu0 %v1479_v14 }
 0x261   : > { %1501 = vadd.xlane.f32.xlu0 %v1481_v7 }
 0x262   : > { %1363 = vadd.xlane.f32.xlu1 %v1332_v20 }
 0x265   : > { %1505 = vadd.xlane.f32.xlu0 %v1483_v34 }
 0x266   : > { %1495 = vadd.xlane.f32.xlu1 %v1478_v19 }
 0x269   : > { %1509 = vadd.xlane.f32.xlu0 %v1485_v37 }
 0x26a   : > { %1499 = vadd.xlane.f32.xlu1 %v1480_v33 }
 0x26d   : > { %v959_v15 = vpop.permute.xlu0 %958  ;;  %1513 = vadd.xlane.f32.xlu0 %v1487_v38  ;;  %v919_v21 = vpop.permute.xlu1 %918 }
 0x26e   : > { %v992_v55 = vsub.f32 %v2895_v35, %v919_v21  ;;  %1503 = vadd.xlane.f32.xlu1 %v1482_v25  ;;  %v1000_v39 = vsub.f32 %v2898_v36, %v959_v15  ;;  %v1486_v35 = vsel %vm1470_vm3, %v2898_v36, 0.0  ;;  %vm1476_vm3 = vcmp.eq.s32.totalorder %v2873_v27, %v3033_v41  ;;  %v1401_v41 = vld [vmem:[#allocation5 + $0x20] sm:$0xff]  ;;  %v1403_v27 = vld [vmem:[#allocation5 + $0x30] sm:$0xff] }
 0x270   : > { %v1009_v59 = vmul.f32 1.442695, %v992_v55  ;;  %v1025_v32 = vmul.f32 1.442695, %v1000_v39 }
 0x271   : > { %v914_v48 = vpop.permute.xlu0 %913  ;;  %1517 = vadd.xlane.f32.xlu0 %v1489_v23 }
 0x272   : > { %1507 = vadd.xlane.f32.xlu1 %v1484_v40  ;;  %2300 = vpow2.f32 %v1009_v59  ;;  %v991_v6 = vsub.f32 %v2905_v42, %v914_v48 }
 0x273   : > { %2302 = vpow2.f32 %v1025_v32 }
 0x274   : > { %v1007_v60 = vmul.f32 1.442695, %v991_v6 }
 0x275   : > { %v954_v56 = vpop.permute.xlu1 %953 }
 0x276   : > { %v999_v26 = vsub.f32 %v2910_v47, %v954_v56  ;;  %1511 = vadd.xlane.f32.xlu1 %v1486_v35 }
 0x278   : > { %v1023_v18 = vmul.f32 1.442695, %v999_v26 }
 0x27a   : > { %2304 = vpow2.f32 %v1023_v18  ;;  %1515 = vadd.xlane.f32.xlu1 %v1488_v46 }
 0x27b   : > { %2306 = vpow2.f32 %v1007_v60 }
 0x27c   : > { %v2301_v42 = vpop.eup %2300 }
 0x27d   : > { %1041 = vadd.xlane.f32.xlu0 %v2301_v42  ;;  %v2303_v36 = vpop.eup %2302 }
 0x27e   : > { %1519 = vadd.xlane.f32.xlu1 %v1490_v28 }
 0x281   : > { %v929_v47 = vpop.permute.xlu1 %928 }
 0x282   : > { %v994_v51 = vsub.f32 %v2939_v62, %v929_v47  ;;  %1057 = vadd.xlane.f32.xlu1 %v2303_v36 }
 0x284   : > { %v2305_v22 = vpop.eup %2304  ;;  %v1013_v24 = vmul.f32 1.442695, %v994_v51 }
 0x285   : > { %v2307_v29 = vpop.eup %2306  ;;  %v969_v14 = vpop.permute.xlu0 %968  ;;  %1055 = vadd.xlane.f32.xlu0 %v2305_v22 }
 0x286   : > { %2308 = vpow2.f32 %v1013_v24  ;;  %v1002_v7 = vsub.f32 %v2945_v1, %v969_v14  ;;  %1039 = vadd.xlane.f32.xlu1 %v2307_v29 }
 0x288   : > { %v1029_v20 = vmul.f32 1.442695, %v1002_v7 }
 0x28a   : > { %2310 = vpow2.f32 %v1029_v20  ;;  %v1491_v20 = vsel %vm1475_vm4, %v2927_v58, 0.0 }
 0x290   : > { %v2309_v30 = vpop.eup %2308 }
 0x291   : > { %1045 = vadd.xlane.f32.xlu1 %v2309_v30  ;;  %v924_v34 = vpop.permute.xlu1 %923  ;;  %v1397_v30 = vld [vmem:[#allocation5] sm:$0xff] }
 0x292   : > { %v993_v19 = vsub.f32 %v2955_v4, %v924_v34 }
 0x294   : > { %v2311_v37 = vpop.eup %2310  ;;  %v1011_v33 = vmul.f32 1.442695, %v993_v19 }
 0x295   : > { %1061 = vadd.xlane.f32.xlu1 %v2311_v37  ;;  %v964_v62 = vpop.permute.xlu1 %963  ;;  %v1399_v37 = vld [vmem:[#allocation5 + $0x10] sm:$0xff] }
 0x296   : > { %2312 = vpow2.f32 %v1011_v33  ;;  %v1001_v38 = vsub.f32 %v2950_v3, %v964_v62 }
 0x298   : > { %v1027_v15 = vmul.f32 1.442695, %v1001_v38 }
 0x29a   : > { %2314 = vpow2.f32 %v1027_v15 }
 0x29d   : > { %v939_v21 = vpop.permute.xlu1 %938 }
 0x29e   : > { %v996_v1 = vsub.f32 %v2973_v10, %v939_v21 }
 0x2a0   : > { %v2313_v25 = vpop.eup %2312  ;;  %v1017_v55 = vmul.f32 1.442695, %v996_v1 }
 0x2a1   : > { %v979_v39 = vpop.permute.xlu0 %978  ;;  %1043 = vadd.xlane.f32.xlu0 %v2313_v25  ;;  %v934_v59 = vpop.permute.xlu1 %933 }
 0x2a2   : > { %2316 = vpow2.f32 %v1017_v55  ;;  %v1004_v4 = vsub.f32 %v2981_v12, %v979_v39  ;;  %v995_v23 = vsub.f32 %v2976_v11, %v934_v59  ;;  %v1405_v59 = vld [vmem:[#allocation5 + $0x40] sm:$0xff] }
 0x2a4   : > { %v2315_v48 = vpop.eup %2314  ;;  %v1033_v40 = vmul.f32 1.442695, %v1004_v4  ;;  %v1015_v32 = vmul.f32 1.442695, %v995_v23  ;;  %v1400_v4 = vld [vmem:[#allocation5 + $0x18] sm:$0xff] }
 0x2a5   : > { %1059 = vadd.xlane.f32.xlu0 %v2315_v48  ;;  %v974_v3 = vpop.permute.xlu1 %973 }
 0x2a6   : > { %2318 = vpow2.f32 %v1033_v40  ;;  %v1003_v6 = vsub.f32 %v2984_v13, %v974_v3  ;;  %v1407_v3 = vld [vmem:[#allocation5 + $0x50] sm:$0xff] }
 0x2a7   : > { %2320 = vpow2.f32 %v1015_v32 }
 0x2a8   : > { %v1031_v10 = vmul.f32 1.442695, %v1003_v6  ;;  %v3792_v6 = vsub.f32 %v3039_v45, %v3045_v50 }
 0x2aa   : > { %2322 = vpow2.f32 %v1031_v10  ;;  %v849_v10 = vmul.f32 1.442695, %v3792_v6  ;;  %v3799_v6 = vld [vmem:[#allocation7_spill] sm:$0xff] }
 0x2ac   : > { %v2317_v56 = vpop.eup %2316 }
 0x2ad   : > { %1049 = vadd.xlane.f32.xlu1 %v2317_v56  ;;  %v1402_v56 = vld [vmem:[#allocation5 + $0x28] sm:$0xff] }
 0x2b0   : > { %v2319_v35 = vpop.eup %2318 }
 0x2b1   : > { %v2321_v26 = vpop.eup %2320  ;;  %1065 = vadd.xlane.f32.xlu1 %v2319_v35 }
 0x2b2   : > { %1047 = vadd.xlane.f32.xlu0 %v2321_v26 }
 0x2b4   : > { %v2323_v12 = vpop.eup %2322 }
 0x2b5   : > { %v949_v60 = vpop.permute.xlu1 %948 }
 0x2b6   : > { %1063 = vadd.xlane.f32.xlu0 %v2323_v12  ;;  %v998_v11 = vsub.f32 %v2917_v53, %v949_v60 }
 0x2b8   : > { %v1021_v18 = vmul.f32 1.442695, %v998_v11  ;;  %v1409_v11 = vld [vmem:[#allocation5 + $0x60] sm:$0xff] }
 0x2b9   : > { %v989_v46 = vpop.permute.xlu0 %988  ;;  %v944_v42 = vpop.permute.xlu1 %943 }
 0x2ba   : > { %2324 = vpow2.f32 %v1021_v18  ;;  %v1006_v13 = vsub.f32 %v2920_v54, %v989_v46  ;;  %v997_v28 = vsub.f32 %v2924_v57, %v944_v42  ;;  %v1492_v57 = vsel %vm1476_vm3, %v2920_v54, 0.0  ;;  %v1252_v54 = vld [vmem:[#allocation4 + $0x78] sm:$0xff] }
 0x2bb   : > { %v3793_v18 = vsub.f32 %v3037_v44, %v3042_v49  ;;  %v1404_v42 = vld [vmem:[#allocation5 + $0x38] sm:$0xff]  ;;  %v1406_v49 = vld [vmem:[#allocation5 + $0x48] sm:$0xff] }
 0x2bc   : > { %v1037_v36 = vmul.f32 1.442695, %v1006_v13  ;;  %v1019_v47 = vmul.f32 1.442695, %v997_v28  ;;  %v3794_v28 = vsub.f32 %v3062_v2, %v3071_v9 }
 0x2bd   : > { %v984_v51 = vpop.permute.xlu1 %983  ;;  %v865_v46 = vmul.f32 1.442695, %v3793_v18 }
 0x2be   : > { %2326 = vpow2.f32 %v1037_v36  ;;  %v1005_v22 = vsub.f32 %v2927_v58, %v984_v51  ;;  %v1398_v58 = vld [vmem:[#allocation5 + $0x8] sm:$0xff]  ;;  %v863_v36 = vmul.f32 1.442695, %v3794_v28  ;;  %v3795_v51 = vsub.f32 %v3047_v52, %v3060_v63 }
 0x2bf   : > { %2328 = vpow2.f32 %v1019_v47 }
 0x2c0   : > { %v1035_v24 = vmul.f32 1.442695, %v1005_v22  ;;  %v847_v44 = vmul.f32 1.442695, %v3795_v51 }
 0x2c2   : > { %2330 = vpow2.f32 %v1035_v24 }
 0x2c3   : > { %2332 = vpow2.f32 %v849_v10  ;;  %v3800_v10 = vld [vmem:[#allocation8_spill] sm:$0xff] }
 0x2c4   : > { %v2325_v29 = vpop.eup %2324  ;;  %2334 = vpow2.f32 %v865_v46 }
 0x2c5   : > { %1053 = vadd.xlane.f32.xlu1 %v2325_v29  ;;  %2336 = vpow2.f32 %v863_v36  ;;  %v1408_v29 = vld [vmem:[#allocation5 + $0x58] sm:$0xff]  ;;  %v3808_v36 = vld [vmem:[#allocation9_spill] sm:$0xff] }
 0x2c6   : > { %2338 = vpow2.f32 %v847_v44 }
 0x2c8   : > { %v2327_v53 = vpop.eup %2326 }
 0x2c9   : > { %v2329_v14 = vpop.eup %2328  ;;  %1069 = vadd.xlane.f32.xlu1 %v2327_v53  ;;  %v880_v53 = vld [vmem:[#allocation3 + $0x8] sm:$0xff] }
 0x2ca   : > { %1051 = vadd.xlane.f32.xlu0 %v2329_v14 }
 0x2cc   : > { %v2331_v7 = vpop.eup %2330 }
 0x2cd   : > { %1523 = vadd.xlane.f32.xlu1 %v1492_v57  ;;  %v2333_v2 = vpop.eup %2332 }
 0x2ce   : > { %1067 = vadd.xlane.f32.xlu0 %v2331_v7  ;;  %v1410_v7 = vld [vmem:[#allocation5 + $0x68] sm:$0xff]  ;;  %v896_v52 = vmul.f32 %v2333_v2, %v880_v53  ;;  %v2335_v63 = vpop.eup %2334  ;;  %v3812_v53 = vld [vmem:[#allocation15_spill] sm:$0xff] }
 0x2d2   : > { %1521 = vadd.xlane.f32.xlu0 %v1491_v20 }
 0x2e6   : > { %v1494_v34 = vpop.xlane.xlu0 %1493 }
 0x2e7   : > { %v1525_v19 = vadd.f32 %v1494_v34, %v1397_v30  ;;  %v888_v30 = vld [vmem:[#allocation3 + $0x48] sm:$0xff]  ;;  %v3796_v34 = vsub.f32 %v3081_v61, %v3086_v8 }
 0x2e9   : > { %1541 = vst.msk [vmem:[#allocation5] sm:$0xff] %vm1087_vm8, %v1525_v19  ;;  %v853_v19 = vmul.f32 1.442695, %v3796_v34 }
 0x2ea   : > { %v1498_v33 = vpop.xlane.xlu0 %1497 }
 0x2eb   : > { %v1527_v62 = vadd.f32 %v1498_v33, %v1399_v37  ;;  %2340 = vpow2.f32 %v853_v19 }
 0x2ed   : > { %1543 = vst.msk [vmem:[#allocation5 + $0x10] sm:$0xff] %vm1087_vm8, %v1527_v62  ;;  %v2337_v62 = vpop.eup %2336 }
 0x2ee   : > { %v1502_v38 = vpop.xlane.xlu0 %1501 }
 0x2ef   : > { %v1529_v15 = vadd.f32 %v1502_v38, %v1401_v41  ;;  %v1364_v21 = vpop.xlane.xlu1 %1363  ;;  %v904_v41 = vmul.f32 %v2335_v63, %v888_v30  ;;  %v2339_v38 = vpop.eup %2338  ;;  %v884_v30 = vld [vmem:[#allocation3 + $0x28] sm:$0xff] }
 0x2f0   : > { %v1380_v1 = vadd.f32 %v1364_v21, %v1252_v54  ;;  %v887_v54 = vld [vmem:[#allocation3 + $0x40] sm:$0xff] }
 0x2f1   : > { %1545 = vst.msk [vmem:[#allocation5 + $0x20] sm:$0xff] %vm1087_vm8, %v1529_v15  ;;  %v879_v21 = vld [vmem:[#allocation3] sm:$0xff]  ;;  %v903_v61 = vmul.f32 %v2337_v62, %v887_v54 }
 0x2f2   : > { %1396 = vst.msk [vmem:[#allocation4 + $0x78] sm:$0xff] %vm1087_vm8, %v1380_v1  ;;  %v1506_v43 = vpop.xlane.xlu0 %1505  ;;  %v3797_v1 = vsub.f32 %v3088_v17, %v3097_v31  ;;  %v3798_v17 = vsub.f32 %v3115_v5, %v3120_v16  ;;  %v3802_v5 = vld [vmem:[#allocation10_spill] sm:$0xff]  ;;  %v3803_v16 = vld [vmem:[#allocation12_spill] sm:$0xff]  ;;  %v883_v54 = vld [vmem:[#allocation3 + $0x20] sm:$0xff] }
 0x2f3   : > { %v1531_v25 = vadd.f32 %v1506_v43, %v1403_v27  ;;  %v1496_v55 = vpop.xlane.xlu1 %1495  ;;  %v895_v43 = vmul.f32 %v2339_v38, %v879_v21 }
 0x2f4   : > { %v1526_v39 = vadd.f32 %v1496_v55, %v1398_v58  ;;  %v869_v27 = vmul.f32 1.442695, %v3797_v1  ;;  %v851_v31 = vmul.f32 1.442695, %v3798_v17  ;;  %v3817_v17 = vld [vmem:[#allocation22_spill] sm:$0xff] }
 0x2f5   : > { %1547 = vst.msk [vmem:[#allocation5 + $0x30] sm:$0xff] %vm1087_vm8, %v1531_v25 }
 0x2f6   : > { %1542 = vst.msk [vmem:[#allocation5 + $0x8] sm:$0xff] %vm1087_vm8, %v1526_v39  ;;  %v1510_v23 = vpop.xlane.xlu0 %1509  ;;  %2342 = vpow2.f32 %v869_v27 }
 0x2f7   : > { %v1533_v48 = vadd.f32 %v1510_v23, %v1405_v59  ;;  %v1500_v40 = vpop.xlane.xlu1 %1499  ;;  %v2341_v59 = vpop.eup %2340  ;;  %2344 = vpow2.f32 %v851_v31  ;;  %v3818_v31 = vld [vmem:[#allocation23_spill] sm:$0xff] }
 0x2f8   : > { %v1528_v32 = vadd.f32 %v1500_v40, %v1400_v4  ;;  %v882_v4 = vld [vmem:[#allocation3 + $0x18] sm:$0xff] }
 0x2f9   : > { %1549 = vst.msk [vmem:[#allocation5 + $0x40] sm:$0xff] %vm1087_vm8, %v1533_v48  ;;  %v898_v23 = vmul.f32 %v2341_v59, %v882_v4 }
 0x2fa   : > { %1544 = vst.msk [vmem:[#allocation5 + $0x18] sm:$0xff] %vm1087_vm8, %v1528_v32  ;;  %v1514_v35 = vpop.xlane.xlu0 %1513  ;;  %v890_v32 = vld [vmem:[#allocation3 + $0x58] sm:$0xff] }
 0x2fb   : > { %v1535_v26 = vadd.f32 %v1514_v35, %v1407_v3  ;;  %v1504_v12 = vpop.xlane.xlu1 %1503 }
 0x2fc   : > { %v1530_v60 = vadd.f32 %v1504_v12, %v1402_v56  ;;  %v3801_v56 = vsub.f32 %v3799_v6, %v3800_v10 }
 0x2fd   : > { %1551 = vst.msk [vmem:[#allocation5 + $0x50] sm:$0xff] %vm1087_vm8, %v1535_v26 }
 0x2fe   : > { %1546 = vst.msk [vmem:[#allocation5 + $0x28] sm:$0xff] %vm1087_vm8, %v1530_v60  ;;  %v1518_v45 = vpop.xlane.xlu0 %1517  ;;  %v867_v35 = vmul.f32 1.442695, %v3801_v56  ;;  %v3823_v56 = vld [vmem:[#allocation21_spill] sm:$0xff] }
 0x2ff   : > { %v1537_v50 = vadd.f32 %v1518_v45, %v1409_v11  ;;  %v1508_v13 = vpop.xlane.xlu1 %1507  ;;  %v3804_v11 = vsub.f32 %v3802_v5, %v3803_v16  ;;  %v3805_v45 = vld [vmem:[#allocation14_spill] sm:$0xff] }
 0x300   : > { %v1532_v47 = vadd.f32 %v1508_v13, %v1404_v42  ;;  %v2343_v48 = vpop.eup %2342  ;;  %2346 = vpow2.f32 %v867_v35  ;;  %v881_v42 = vld [vmem:[#allocation3 + $0x10] sm:$0xff]  ;;  %v3824_v35 = vsub.f32 %v3823_v56, %v3205_v0  ;;  %v3413_v56 = vld [vmem:[%s2526_s20 + $0x40] sm:$0xff] (!%p2100_p9) }
 0x301   : > { %1553 = vst.msk [vmem:[#allocation5 + $0x60] sm:$0xff] %vm1087_vm8, %v1537_v50  ;;  %v906_v26 = vmul.f32 %v2343_v48, %v890_v32  ;;  %v857_v18 = vmul.f32 1.442695, %v3804_v11  ;;  %v2345_v46 = vpop.eup %2344  ;;  %v3806_v50 = vld [vmem:[#allocation16_spill] sm:$0xff]  ;;  %v3820_v32 = vld [vmem:[#allocation17_spill] sm:$0xff]  ;;  %vm1665_vm0 = vcmp.ne.s32.totalorder (!%p2100_p9), %v3413_v56, 4294967196 }
 0x302   : > { %1548 = vst.msk [vmem:[#allocation5 + $0x38] sm:$0xff] %vm1087_vm8, %v1532_v47  ;;  %v3807_v13 = vsub.f32 %v3805_v45, %v3806_v50  ;;  %v3809_v47 = vld [vmem:[#allocation11_spill] sm:$0xff]  ;;  %v885_v45 = vld [vmem:[#allocation3 + $0x30] sm:$0xff] }
 0x303   : > { %v1512_v22 = vpop.xlane.xlu1 %1511  ;;  %2348 = vpow2.f32 %v857_v18  ;;  %v3810_v51 = vsub.f32 %v3808_v36, %v3809_v47  ;;  %v894_v18 = vld [vmem:[#allocation3 + $0x78] sm:$0xff]  ;;  %v893_v0 = vld [vmem:[#allocation3 + $0x70] sm:$0xff] }
 0x304   : > { %v1534_v24 = vadd.f32 %v1512_v22, %v1406_v49  ;;  %v873_v28 = vmul.f32 1.442695, %v3807_v13  ;;  %v897_v49 = vmul.f32 %v2345_v46, %v881_v42 }
 0x305   : > { %v855_v44 = vmul.f32 1.442695, %v3810_v51 }
 0x306   : > { %1550 = vst.msk [vmem:[#allocation5 + $0x48] sm:$0xff] %vm1087_vm8, %v1534_v24  ;;  %2350 = vpow2.f32 %v873_v28 }
 0x307   : > { %v1516_v9 = vpop.xlane.xlu1 %1515  ;;  %2352 = vpow2.f32 %v855_v44 }
 0x308   : > { %v1536_v14 = vadd.f32 %v1516_v9, %v1408_v29  ;;  %v889_v29 = vld [vmem:[#allocation3 + $0x50] sm:$0xff] }
 0x309   : > { %v3811_v9 = vld [vmem:[#allocation13_spill] sm:$0xff] }
 0x30a   : > { %1552 = vst.msk [vmem:[#allocation5 + $0x58] sm:$0xff] %vm1087_vm8, %v1536_v14  ;;  %v1042_v57 = vpop.xlane.xlu0 %1041  ;;  %v2347_v22 = vpop.eup %2346  ;;  %v3813_v14 = vsub.f32 %v3811_v9, %v3812_v53  ;;  %v1411_v53 = vld [vmem:[#allocation5 + $0x70] sm:$0xff] }
 0x30b   : > { %v1520_v20 = vpop.xlane.xlu1 %1519  ;;  %v1072_v37 = vadd.f32 %v1042_v57, %v896_v52  ;;  %v905_v52 = vmul.f32 %v2347_v22, %v889_v29 }
 0x30c   : > { %v1538_v33 = vadd.f32 %v1520_v20, %v1410_v7  ;;  %v871_v7 = vmul.f32 1.442695, %v3813_v14 }
 0x30d   : > { %1089 = vst.msk [vmem:[#allocation3 + $0x8] sm:$0xff] %vm1087_vm8, %v1072_v37  ;;  %v2349_v20 = vpop.eup %2348 }
 0x30e   : > { %1554 = vst.msk [vmem:[#allocation5 + $0x68] sm:$0xff] %vm1087_vm8, %v1538_v33  ;;  %2354 = vpow2.f32 %v871_v7  ;;  %v900_v34 = vmul.f32 %v2349_v20, %v884_v30  ;;  %v892_v33 = vld [vmem:[#allocation3 + $0x68] sm:$0xff] }
 0x30f   : > { %v1058_v15 = vpop.xlane.xlu1 %1057 }
 0x310   : > { %v1080_v58 = vadd.f32 %v1058_v15, %v904_v41  ;;  %v2351_v19 = vpop.eup %2350 }
 0x311   : > { %v2353_v62 = vpop.eup %2352  ;;  %v908_v38 = vmul.f32 %v2351_v19, %v892_v33  ;;  %v1641_v33 = vld [vmem:[%s2526_s20] sm:$0xff] (!%p2100_p9) }
 0x312   : > { %1097 = vst.msk [vmem:[#allocation3 + $0x48] sm:$0xff] %vm1087_vm8, %v1080_v58  ;;  %v1056_v8 = vpop.xlane.xlu0 %1055  ;;  %v899_v15 = vmul.f32 %v2353_v62, %v883_v54  ;;  %v3382_v54 = vld [vmem:[%s2526_s20 + $0x8] sm:$0xff] (!%p2100_p9)  ;;  %vm1657_vm5 = vcmp.ne.s32.totalorder (!%p2100_p9), %v1641_v33, 4294967196  ;;  %v1711_v33 = vld [vmem:[#allocation4 + $0x30] sm:$0xff] (!%p2100_p9) }
 0x313   : > { %v1079_v25 = vadd.f32 %v1056_v8, %v903_v61  ;;  %v1040_v55 = vpop.xlane.xlu1 %1039  ;;  %v891_v61 = vld [vmem:[#allocation3 + $0x60] sm:$0xff]  ;;  %v3814_v8 = vld [vmem:[#allocation18_spill] sm:$0xff]  ;;  %vm1658_vm9 = vcmp.ne.s32.totalorder (!%p2100_p9), %v3382_v54, 4294967196 }
 0x314   : > { %v1071_v39 = vadd.f32 %v1040_v55, %v895_v43  ;;  %v3815_v43 = vld [vmem:[#allocation20_spill] sm:$0xff]  ;;  %v3457_v54 = vld [vmem:[%s2534_s25] sm:$0xff] (!%p2100_p9) }
 0x315   : > { %1096 = vst.msk [vmem:[#allocation3 + $0x40] sm:$0xff] %vm1087_vm8, %v1079_v25  ;;  %v3816_v25 = vsub.f32 %v3814_v8, %v3815_v43  ;;  %v1706_v43 = vld [vmem:[#allocation4 + $0x8] sm:$0xff] (!%p2100_p9)  ;;  %vm1689_vm4 = vcmp.ne.s32.totalorder (!%p2100_p9), %v3457_v54, 4294967196 }
 0x316   : > { %1088 = vst.msk [vmem:[#allocation3] sm:$0xff] %vm1087_vm8, %v1071_v39 }
 0x317   : > { %v861_v55 = vmul.f32 1.442695, %v3816_v25  ;;  %v3394_v25 = vld [vmem:[%s2526_s20 + $0x28] sm:$0xff] (!%p2100_p9) }
 0x318   : > { %v2355_v1 = vpop.eup %2354  ;;  %vm1662_vm13 = vcmp.ne.s32.totalorder (!%p2100_p9), %v3394_v25, 4294967196  ;;  %v1715_v25 = vld [vmem:[#allocation4 + $0x50] sm:$0xff] (!%p2100_p9) }
 0x319   : > { %v907_v59 = vmul.f32 %v2355_v1, %v891_v61  ;;  %2356 = vpow2.f32 %v861_v55  ;;  %v3388_v1 = vld [vmem:[%s2526_s20 + $0x18] sm:$0xff] (!%p2100_p9)  ;;  %v3397_v55 = vld [vmem:[%s2526_s20 + $0x30] sm:$0xff] (!%p2100_p9) }
 0x31a   : > { %vm1660_vm11 = vcmp.ne.s32.totalorder (!%p2100_p9), %v3388_v1, 4294967196  ;;  %vm1663_vm14 = vcmp.ne.s32.totalorder (!%p2100_p9), %v3397_v55, 4294967196 }
 0x31e   : > { %v1046_v40 = vpop.xlane.xlu1 %1045 }
 0x31f   : > { %v1074_v3 = vadd.f32 %v1046_v40, %v898_v23  ;;  %v3819_v23 = vsub.f32 %v3817_v17, %v3818_v31 }
 0x321   : > { %1091 = vst.msk [vmem:[#allocation3 + $0x18] sm:$0xff] %vm1087_vm8, %v1074_v3  ;;  %v877_v48 = vmul.f32 1.442695, %v3819_v23  ;;  %v3821_v3 = vld [vmem:[#allocation19_spill] sm:$0xff] }
 0x322   : > { %v1062_v12 = vpop.xlane.xlu1 %1061  ;;  %v3822_v6 = vsub.f32 %v3820_v32, %v3821_v3  ;;  %v1564_v32 = vld [vmem:[#allocation2 + $0x18] sm:$0xff] (!%p2100_p9) }
 0x323   : > { %v1082_v60 = vadd.f32 %v1062_v12, %v906_v26  ;;  %2358 = vpow2.f32 %v877_v48  ;;  %v875_v26 = vmul.f32 1.442695, %v3824_v35  ;;  %v2357_v12 = vpop.eup %2356  ;;  %v1563_v48 = vld [vmem:[#allocation2 + $0x10] sm:$0xff] (!%p2100_p9) }
 0x324   : > { %v859_v10 = vmul.f32 1.442695, %v3822_v6 }
 0x325   : > { %1099 = vst.msk [vmem:[#allocation3 + $0x58] sm:$0xff] %vm1087_vm8, %v1082_v60  ;;  %v886_v60 = vld [vmem:[#allocation3 + $0x38] sm:$0xff] }
 0x326   : > { %2360 = vpow2.f32 %v859_v10  ;;  %v902_v5 = vmul.f32 %v2357_v12, %v886_v60 }
 0x327   : > { %2362 = vpow2.f32 %v875_v26 }
 0x328   : > { %v1580_v20 = vld [vmem:[#allocation3 + $0x18] sm:$0xff] (!%p2100_p9) }
 0x32c   : > { %v1588_v35 = vld [vmem:[#allocation3 + $0x58] sm:$0xff] (!%p2100_p9) }
 0x32d   : > { %v2359_v16 = vpop.eup %2358 }
 0x32e   : > { %v1044_v24 = vpop.xlane.xlu0 %1043  ;;  %v910_v50 = vmul.f32 %v2359_v16, %v894_v18  ;;  %v3418_v16 = vld [vmem:[%s2526_s20 + $0x48] sm:$0xff] (!%p2100_p9) }
 0x32f   : > { %v1073_v2 = vadd.f32 %v1044_v24, %v897_v49  ;;  %v1412_v49 = vld [vmem:[#allocation5 + $0x78] sm:$0xff]  ;;  %vm1666_vm1 = vcmp.ne.s32.totalorder (!%p2100_p9), %v3418_v16, 4294967196 }
 0x330   : > { %v2361_v46 = vpop.eup %2360 }
 0x331   : > { %1090 = vst.msk [vmem:[#allocation3 + $0x10] sm:$0xff] %vm1087_vm8, %v1073_v2  ;;  %v901_v13 = vmul.f32 %v2361_v46, %v885_v45  ;;  %v2363_v36 = vpop.eup %2362 }
 0x332   : > { %v1060_v63 = vpop.xlane.xlu0 %1059  ;;  %v909_v22 = vmul.f32 %v2363_v36, %v893_v0  ;;  %v1566_v0 = vld [vmem:[#allocation2 + $0x28] sm:$0xff] (!%p2100_p9) }
 0x333   : > { %v1081_v57 = vadd.f32 %v1060_v63, %v905_v52  ;;  %v1577_v52 = vld [vmem:[#allocation3] sm:$0xff] (!%p2100_p9)  ;;  %v1578_v63 = vld [vmem:[#allocation3 + $0x8] sm:$0xff] (!%p2100_p9) }
 0x334   : > { %2364 = vlog2.f32 (!%p2100_p9), %v1577_v52 }
 0x335   : > { %1098 = vst.msk [vmem:[#allocation3 + $0x50] sm:$0xff] %vm1087_vm8, %v1081_v57  ;;  %2366 = vlog2.f32 (!%p2100_p9), %v1578_v63 }
 0x338   : > { %v1579_v57 = vld [vmem:[#allocation3 + $0x10] sm:$0xff] (!%p2100_p9) }
 0x339   : > { %2368 = vlog2.f32 (!%p2100_p9), %v1579_v57  ;;  %v1568_v57 = vld [vmem:[#allocation2 + $0x38] sm:$0xff] (!%p2100_p9) }
 0x33a   : > { %v1050_v37 = vpop.xlane.xlu1 %1049  ;;  %2370 = vlog2.f32 (!%p2100_p9), %v1580_v20  ;;  %v3446_v20 = vld [vmem:[%s2526_s20 + $0x60] sm:$0xff] (!%p2100_p9) }
 0x33b   : > { %v1076_v41 = vadd.f32 %v1050_v37, %v900_v34  ;;  %v1561_v37 = vld [vmem:[#allocation2] sm:$0xff] (!%p2100_p9)  ;;  %vm1669_vm7 = vcmp.ne.s32.totalorder (!%p2100_p9), %v3446_v20, 4294967196  ;;  %v1838_v20 = vld [vmem:[#allocation6 + $0x28] sm:$0xff] (!%p2100_p9) }
 0x33c   : > { %v1587_v17 = vld [vmem:[#allocation3 + $0x50] sm:$0xff] (!%p2100_p9)  ;;  %1854 = vst.msk [vmem:[%s2553_s22 + $0x28] sm:$0xff] (!%p2100_p9), %vm1087_vm8, %v1838_v20 }
 0x33d   : > { %1093 = vst.msk [vmem:[#allocation3 + $0x28] sm:$0xff] %vm1087_vm8, %v1076_v41  ;;  %v1562_v41 = vld [vmem:[#allocation2 + $0x8] sm:$0xff] (!%p2100_p9) }
 0x33e   : > { %v1066_v21 = vpop.xlane.xlu1 %1065 }
 0x33f   : > { %v1048_v27 = vpop.xlane.xlu0 %1047  ;;  %v1084_v58 = vadd.f32 %v1066_v21, %v908_v38  ;;  %v3385_v38 = vld [vmem:[%s2526_s20 + $0x10] sm:$0xff] (!%p2100_p9)  ;;  %v1705_v21 = vld [vmem:[#allocation4] sm:$0xff] (!%p2100_p9) }
 0x340   : > { %v1075_v39 = vadd.f32 %v1048_v27, %v899_v15  ;;  %v2365_v15 = vpop.eup (!%p2100_p9), %2364  ;;  %v3391_v27 = vld [vmem:[%s2526_s20 + $0x20] sm:$0xff] (!%p2100_p9)  ;;  %vm1659_vm10 = vcmp.ne.s32.totalorder (!%p2100_p9), %v3385_v38, 4294967196 }
 0x341   : > { %1101 = vst.msk [vmem:[#allocation3 + $0x68] sm:$0xff] %vm1087_vm8, %v1084_v58  ;;  %v1585_v58 = vld [vmem:[#allocation3 + $0x40] sm:$0xff] (!%p2100_p9)  ;;  %v2367_v61 = vpop.eup (!%p2100_p9), %2366  ;;  %v1594_v8 = vmul.f32 (!%p2100_p9), 0.6931472, %v2365_v15  ;;  %vm1661_vm12 = vcmp.ne.s32.totalorder (!%p2100_p9), %v3391_v27, 4294967196 }
 0x342   : > { %1092 = vst.msk [vmem:[#allocation3 + $0x20] sm:$0xff] %vm1087_vm8, %v1075_v39  ;;  %v1586_v39 = vld [vmem:[#allocation3 + $0x48] sm:$0xff] (!%p2100_p9)  ;;  %v1713_v27 = vld [vmem:[#allocation4 + $0x40] sm:$0xff] (!%p2100_p9) }
 0x343   : > { %v1064_v4 = vpop.xlane.xlu0 %1063  ;;  %v2369_v31 = vpop.eup (!%p2100_p9), %2368  ;;  %v3404_v23 = vadd.f32 (!%p2100_p9), %v1594_v8, %v1561_v37  ;;  %v1570_v8 = vld [vmem:[#allocation2 + $0x48] sm:$0xff] (!%p2100_p9) }
 0x344   : > { %v1083_v40 = vadd.f32 %v1064_v4, %v907_v59  ;;  %v1582_v34 = vld [vmem:[#allocation3 + $0x28] sm:$0xff] (!%p2100_p9)  ;;  %v1596_v59 = vmul.f32 (!%p2100_p9), 0.6931472, %v2367_v61  ;;  %v3402_v4 = vld [vmem:[%s2526_s20 + $0x38] sm:$0xff] (!%p2100_p9)  ;;  %v2371_v3 = vpop.eup (!%p2100_p9), %2370  ;;  %v1598_v10 = vmul.f32 (!%p2100_p9), 0.6931472, %v2369_v31 }
 0x345   : > { %v1721_v12 = vsub.f32 (!%p2100_p9), %v1705_v21, %v3404_v23  ;;  %v1600_v60 = vmul.f32 (!%p2100_p9), 0.6931472, %v2371_v3  ;;  %vm1664_vm15 = vcmp.ne.s32.totalorder (!%p2100_p9), %v3402_v4, 4294967196  ;;  %v1569_v61 = vld [vmem:[#allocation2 + $0x40] sm:$0xff] (!%p2100_p9)  ;;  %v3475_v31 = vld [vmem:[%s2526_s20 + $0x70] sm:$0xff] (!%p2100_p9)  ;;  %v1574_v4 = vld [vmem:[#allocation2 + $0x68] sm:$0xff] (!%p2100_p9) }
 0x346   : > { %1100 = vst.msk [vmem:[#allocation3 + $0x60] sm:$0xff] %vm1087_vm8, %v1083_v40  ;;  %v1707_v40 = vld [vmem:[#allocation4 + $0x10] sm:$0xff] (!%p2100_p9)  ;;  %v3408_v6 = vadd.f32 (!%p2100_p9), %v1596_v59, %v1562_v41  ;;  %v3421_v46 = vadd.f32 (!%p2100_p9), %v1598_v10, %v1563_v48  ;;  %v3454_v41 = vld [vmem:[%s2526_s20 + $0x68] sm:$0xff] (!%p2100_p9)  ;;  %v1769_v48 = vld [vmem:[#allocation5] sm:$0xff] (!%p2100_p9) }
 0x347   : > { %v1737_v36 = vsel (!%p2100_p9), %vm1657_vm5, %v1721_v12, 0.0  ;;  %vm1670_vm3 = vcmp.ne.s32.totalorder (!%p2100_p9), %v3454_v41, 4294967196  ;;  %vm1671_vm5 = vcmp.ne.s32.totalorder (!%p2100_p9), %v3475_v31, 4294967196  ;;  %v3629_v41 = vld [vmem:[%s2534_s25 + $0x58] sm:$0xff] (!%p2100_p9)  ;;  %v1846_v31 = vld [vmem:[#allocation6 + $0x68] sm:$0xff] (!%p2100_p9) }
 0x348   : > { %v1722_v18 = vsub.f32 (!%p2100_p9), %v1706_v43, %v3408_v6  ;;  %1753 = vst.msk [vmem:[%s2539_s11] sm:$0xff] (!%p2100_p9), %vm1087_vm8, %v1737_v36  ;;  %v1572_v36 = vld [vmem:[#allocation2 + $0x58] sm:$0xff] (!%p2100_p9)  ;;  %1862 = vst.msk [vmem:[%s2553_s22 + $0x68] sm:$0xff] (!%p2100_p9), %vm1087_vm8, %v1846_v31 }
 0x349   : > { %v1581_v30 = vld [vmem:[#allocation3 + $0x20] sm:$0xff] (!%p2100_p9) }
 0x34a   : > { %2372 = vlog2.f32 (!%p2100_p9), %v1581_v30 }
 0x34b   : > { %2374 = vlog2.f32 (!%p2100_p9), %v1582_v34 }
 0x352   : > { %v1054_v11 = vpop.xlane.xlu1 %1053 }
 0x353   : > { %v1078_v42 = vadd.f32 %v1054_v11, %v902_v5  ;;  %v1565_v5 = vld [vmem:[#allocation2 + $0x20] sm:$0xff] (!%p2100_p9) }
 0x354   : > { %v2373_v26 = vpop.eup (!%p2100_p9), %2372  ;;  %v1589_v11 = vld [vmem:[#allocation3 + $0x60] sm:$0xff] (!%p2100_p9) }
 0x355   : > { %1095 = vst.msk [vmem:[#allocation3 + $0x38] sm:$0xff] %vm1087_vm8, %v1078_v42  ;;  %v1708_v42 = vld [vmem:[#allocation4 + $0x18] sm:$0xff] (!%p2100_p9)  ;;  %v1602_v45 = vmul.f32 (!%p2100_p9), 0.6931472, %v2373_v26 }
 0x356   : > { %v1070_v28 = vpop.xlane.xlu1 %1069 }
 0x357   : > { %v1052_v47 = vpop.xlane.xlu0 %1051  ;;  %v1086_v51 = vadd.f32 %v1070_v28, %v910_v50  ;;  %v3424_v50 = vld [vmem:[%s2526_s20 + $0x50] sm:$0xff] (!%p2100_p9)  ;;  %v2375_v28 = vpop.eup (!%p2100_p9), %2374 }
 0x358   : > { %v1077_v44 = vadd.f32 %v1052_v47, %v901_v13  ;;  %v1590_v13 = vld [vmem:[#allocation3 + $0x68] sm:$0xff] (!%p2100_p9)  ;;  %v3427_v47 = vadd.f32 (!%p2100_p9), %v1600_v60, %v1564_v32  ;;  %vm1667_vm2 = vcmp.ne.s32.totalorder (!%p2100_p9), %v3424_v50, 4294967196 }
 0x359   : > { %1103 = vst.msk [vmem:[#allocation3 + $0x78] sm:$0xff] %vm1087_vm8, %v1086_v51  ;;  %v1709_v51 = vld [vmem:[#allocation4 + $0x20] sm:$0xff] (!%p2100_p9) }
 0x35a   : > { %1094 = vst.msk [vmem:[#allocation3 + $0x30] sm:$0xff] %vm1087_vm8, %v1077_v44  ;;  %v1524_v24 = vpop.xlane.xlu1 %1523  ;;  %v1710_v44 = vld [vmem:[#allocation4 + $0x28] sm:$0xff] (!%p2100_p9)  ;;  %v1724_v52 = vsub.f32 (!%p2100_p9), %v1708_v42, %v3427_v47 }
 0x35b   : > { %v1068_v29 = vpop.xlane.xlu0 %1067  ;;  %v1540_v2 = vadd.f32 %v1524_v24, %v1412_v49  ;;  %v1723_v24 = vsub.f32 (!%p2100_p9), %v1707_v40, %v3421_v46  ;;  %v1674_v40 = vld [vmem:[%s2534_s25 + $0x8] sm:$0xff] (!%p2100_p9) }
 0x35c   : > { %v1085_v9 = vadd.f32 %v1068_v29, %v909_v22  ;;  %1560 = sbr.rel (%p2100_p9) target bundleno = 904 (0x388), region = 48  ;;  %v1584_v62 = vld [vmem:[#allocation3 + $0x38] sm:$0xff] (!%p2100_p9)  ;;  %v1738_v22 = vsel (!%p2100_p9), %vm1658_vm9, %v1722_v18, 0.0  ;;  %v3435_v29 = vadd.f32 (!%p2100_p9), %v1602_v45, %v1565_v5  ;;  %v1740_v21 = vsel (!%p2100_p9), %vm1660_vm11, %v1724_v52, 0.0  ;;  %v1714_v5 = vld [vmem:[#allocation4 + $0x48] sm:$0xff] (!%p2100_p9) }
 0x35d   : > { %1556 = vst.msk [vmem:[#allocation5 + $0x78] sm:$0xff] %vm1087_vm8, %v1540_v2  ;;  %v1604_v2 = vmul.f32 (!%p2100_p9), 0.6931472, %v2375_v28  ;;  %1754 = vst.msk [vmem:[%s2539_s11 + $0x8] sm:$0xff] (!%p2100_p9), %vm1087_vm8, %v1738_v22  ;;  %v1739_v34 = vsel (!%p2100_p9), %vm1659_vm10, %v1723_v24, 0.0  ;;  %v3489_v18 = vld [vmem:[%s2526_s20 + $0x78] sm:$0xff] (!%p2100_p9) }
 0x35e   : > { %1102 = vst.msk [vmem:[#allocation3 + $0x70] sm:$0xff] %vm1087_vm8, %v1085_v9  ;;  %v1567_v9 = vld [vmem:[#allocation2 + $0x30] sm:$0xff] (!%p2100_p9)  ;;  %1755 = vst.msk [vmem:[%s2539_s11 + $0x10] sm:$0xff] (!%p2100_p9), %vm1087_vm8, %v1739_v34  ;;  %v1770_v42 = vld [vmem:[#allocation5 + $0x8] sm:$0xff] (!%p2100_p9)  ;;  %vm1690_vm9 = vcmp.ne.s32.totalorder (!%p2100_p9), %v1674_v40, 4294967196  ;;  %vm1672_vm10 = vcmp.ne.s32.totalorder (!%p2100_p9), %v3489_v18, 4294967196 }
 0x35f   : > { %v1522_v14 = vpop.xlane.xlu0 %1521  ;;  %v3451_v37 = vadd.f32 (!%p2100_p9), %v1604_v2, %v1566_v0  ;;  %1756 = vst.msk [vmem:[%s2539_s11 + $0x18] sm:$0xff] (!%p2100_p9), %vm1087_vm8, %v1740_v21  ;;  %v1785_v0 = vsub.f32 (!%p2100_p9), %v1769_v48, %v3404_v23  ;;  %v1573_v2 = vld [vmem:[#allocation2 + $0x60] sm:$0xff] (!%p2100_p9)  ;;  %v1786_v34 = vsub.f32 (!%p2100_p9), %v1770_v42, %v3408_v6  ;;  %v1771_v21 = vld [vmem:[#allocation5 + $0x10] sm:$0xff] (!%p2100_p9)  ;;  %v3553_v40 = vld [vmem:[%s2534_s25 + $0x28] sm:$0xff] (!%p2100_p9) }
 0x360   : > { %v1539_v7 = vadd.f32 %v1522_v14, %v1411_v53  ;;  %v3439_v53 = vld [vmem:[%s2526_s20 + $0x58] sm:$0xff] (!%p2100_p9) }
 0x361   : > { %v1583_v19 = vld [vmem:[#allocation3 + $0x30] sm:$0xff] (!%p2100_p9)  ;;  %v1592_v30 = vld [vmem:[#allocation3 + $0x78] sm:$0xff] (!%p2100_p9)  ;;  %vm1668_vm6 = vcmp.ne.s32.totalorder (!%p2100_p9), %v3439_v53, 4294967196  ;;  %v1726_v59 = vsub.f32 (!%p2100_p9), %v1710_v44, %v3451_v37 }
 0x362   : > { %1555 = vst.msk [vmem:[#allocation5 + $0x70] sm:$0xff] %vm1087_vm8, %v1539_v7  ;;  %2376 = vlog2.f32 (!%p2100_p9), %v1583_v19  ;;  %v1725_v19 = vsub.f32 (!%p2100_p9), %v1709_v51, %v3435_v29  ;;  %v1716_v51 = vld [vmem:[#allocation4 + $0x58] sm:$0xff] (!%p2100_p9) }
 0x363   : > { %2378 = vlog2.f32 %v1584_v62  ;;  %v1742_v26 = vsel %vm1662_vm13, %v1726_v59, 0.0  ;;  %v3539_v59 = vld [vmem:[%s2534_s25 + $0x20] sm:$0xff]  ;;  %v3571_v42 = vld [vmem:[%s2534_s25 + $0x38] sm:$0xff] }
 0x364   : > { %2380 = vlog2.f32 %v1585_v58  ;;  %v1712_v58 = vld [vmem:[#allocation4 + $0x38] sm:$0xff]  ;;  %1758 = vst.msk [vmem:[%s2539_s11 + $0x28] sm:$0xff] %vm1087_vm8, %v1742_v26  ;;  %vm1693_vm13 = vcmp.ne.s32.totalorder %v3539_v59, 4294967196 }
 0x365   : > { %2382 = vlog2.f32 %v1586_v39  ;;  %v1591_v14 = vld [vmem:[#allocation3 + $0x70] sm:$0xff]  ;;  %v1741_v39 = vsel %vm1661_vm12, %v1725_v19, 0.0  ;;  %v1836_v53 = vld [vmem:[#allocation6 + $0x18] sm:$0xff] }
 0x366   : > { %2384 = vlog2.f32 %v1587_v17  ;;  %1757 = vst.msk [vmem:[%s2539_s11 + $0x20] sm:$0xff] %vm1087_vm8, %v1741_v39  ;;  %v1802_v39 = vsel %vm1690_vm9, %v1786_v34, 0.0  ;;  %1852 = vst.msk [vmem:[%s2553_s22 + $0x18] sm:$0xff] %vm1087_vm8, %v1836_v53  ;;  %v3626_v34 = vld [vmem:[#allocation5 + $0x50] sm:$0xff] }
 0x367   : > { %2386 = vlog2.f32 %v1588_v35  ;;  %v1571_v35 = vld [vmem:[#allocation2 + $0x50] sm:$0xff]  ;;  %1818 = vst.msk [vmem:[%s2548_s19 + $0x8] sm:$0xff] %vm1087_vm8, %v1802_v39 }
 0x368   : > { %2388 = vlog2.f32 %v1589_v11 }
 0x369   : > { %2390 = vlog2.f32 %v1590_v13 }
 0x36a   : > { %2392 = vlog2.f32 %v1591_v14  ;;  %v3509_v14 = vld [vmem:[%s2534_s25 + $0x10] sm:$0xff] }
 0x36b   : > { %2394 = vlog2.f32 %v1592_v30  ;;  %v1801_v30 = vsel %vm1689_vm4, %v1785_v0, 0.0  ;;  %vm1691_vm11 = vcmp.ne.s32.totalorder %v3509_v14, 4294967196  ;;  %v1839_v14 = vld [vmem:[#allocation6 + $0x30] sm:$0xff] }
 0x36c   : > { %v2377_v49 = vpop.eup %2376  ;;  %1817 = vst.msk [vmem:[%s2548_s19] sm:$0xff] %vm1087_vm8, %v1801_v30  ;;  %v3624_v30 = vld [vmem:[%s2534_s25 + $0x50] sm:$0xff]  ;;  %1855 = vst.msk [vmem:[%s2553_s22 + $0x30] sm:$0xff] %vm1087_vm8, %v1839_v14 }
 0x36d   : > { %v2379_v7 = vpop.eup %2378  ;;  %v1606_v63 = vmul.f32 0.6931472, %v2377_v49 }
 0x36e   : > { %v1608_v62 = vmul.f32 0.6931472, %v2379_v7  ;;  %v2381_v15 = vpop.eup %2380 }
 0x36f   : > { %v3463_v38 = vadd.f32 %v1606_v63, %v1567_v9  ;;  %v2383_v43 = vpop.eup %2382  ;;  %v1610_v17 = vmul.f32 0.6931472, %v2381_v15  ;;  %v3506_v9 = vld [vmem:[#allocation4 + $0x60] sm:$0xff]  ;;  %v3514_v63 = vld [vmem:[#allocation4 + $0x68] sm:$0xff] }
 0x370   : > { %v3471_v1 = vadd.f32 %v1608_v62, %v1568_v57  ;;  %v2385_v32 = vpop.eup %2384  ;;  %v1612_v10 = vmul.f32 0.6931472, %v2383_v43  ;;  %v1575_v57 = vld [vmem:[#allocation2 + $0x70] sm:$0xff]  ;;  %v1576_v43 = vld [vmem:[#allocation2 + $0x78] sm:$0xff] }
 0x371   : > { %v1727_v3 = vsub.f32 %v1711_v33, %v3463_v38  ;;  %v3486_v60 = vadd.f32 %v1610_v17, %v1569_v61  ;;  %v1614_v11 = vmul.f32 0.6931472, %v2385_v32  ;;  %v2387_v45 = vpop.eup %2386  ;;  %v1772_v61 = vld [vmem:[#allocation5 + $0x18] sm:$0xff]  ;;  %v3541_v17 = vld [vmem:[#allocation5 + $0x20] sm:$0xff] }
 0x372   : > { %v1728_v12 = vsub.f32 %v1712_v58, %v3471_v1  ;;  %v3495_v28 = vadd.f32 %v1612_v10, %v1570_v8  ;;  %v2389_v44 = vpop.eup %2388  ;;  %v1616_v24 = vmul.f32 0.6931472, %v2387_v45  ;;  %v1676_v58 = vld [vmem:[%s2534_s25 + $0x18] sm:$0xff]  ;;  %v3534_v8 = vld [vmem:[#allocation4 + $0x70] sm:$0xff]  ;;  %v1833_v45 = vld [vmem:[#allocation6] sm:$0xff] }
 0x373   : > { %v1743_v13 = vsel %vm1663_vm14, %v1727_v3, 0.0  ;;  %v1729_v55 = vsub.f32 %v1713_v27, %v3486_v60  ;;  %v3504_v22 = vadd.f32 %v1614_v11, %v1571_v35  ;;  %v2391_v7 = vpop.eup %2390  ;;  %v1618_v52 = vmul.f32 0.6931472, %v2389_v44  ;;  %v3555_v27 = vld [vmem:[#allocation5 + $0x28] sm:$0xff]  ;;  %v3558_v10 = vld [vmem:[%s2534_s25 + $0x30] sm:$0xff]  ;;  %v3582_v44 = vld [vmem:[%s2534_s25 + $0x40] sm:$0xff] }
 0x374   : > { %1759 = vst.msk [vmem:[%s2539_s11 + $0x30] sm:$0xff] %vm1087_vm8, %v1743_v13  ;;  %v1744_v49 = vsel %vm1664_vm15, %v1728_v12, 0.0  ;;  %v1730_v23 = vsub.f32 %v1714_v5, %v3495_v28  ;;  %v3523_v62 = vadd.f32 %v1616_v24, %v1572_v36  ;;  %v1620_v15 = vmul.f32 0.6931472, %v2391_v7  ;;  %v2393_v54 = vpop.eup %2392  ;;  %v3560_v35 = vld [vmem:[#allocation5 + $0x30] sm:$0xff]  ;;  %v3566_v12 = vld [vmem:[#allocation4 + $0x78] sm:$0xff] }
 0x375   : > { %1760 = vst.msk [vmem:[%s2539_s11 + $0x38] sm:$0xff] %vm1087_vm8, %v1744_v49  ;;  %v1745_v19 = vsel %vm1665_vm0, %v1729_v55, 0.0  ;;  %v1731_v33 = vsub.f32 %v1715_v25, %v3504_v22  ;;  %v3532_v56 = vadd.f32 %v1618_v52, %v1573_v2  ;;  %v1622_v3 = vmul.f32 0.6931472, %v2393_v54  ;;  %v2395_v26 = vpop.eup %2394  ;;  %v1834_v13 = vld [vmem:[#allocation6 + $0x8] sm:$0xff]  ;;  %1849 = vst.msk [vmem:[%s2553_s22] sm:$0xff] %vm1087_vm8, %v1833_v45 }
 0x376   : > { %1761 = vst.msk [vmem:[%s2539_s11 + $0x40] sm:$0xff] %vm1087_vm8, %v1745_v19  ;;  %v1746_v6 = vsel %vm1666_vm1, %v1730_v23, 0.0  ;;  %v1732_v48 = vsub.f32 %v1716_v51, %v3523_v62  ;;  %v3548_v32 = vadd.f32 %v1620_v15, %v1574_v4  ;;  %v1787_v5 = vsub.f32 %v1771_v21, %v3421_v46  ;;  %v3579_v46 = vld [vmem:[#allocation5 + $0x38] sm:$0xff]  ;;  %1850 = vst.msk [vmem:[%s2553_s22 + $0x8] sm:$0xff] %vm1087_vm8, %v1834_v13  ;;  %v1837_v49 = vld [vmem:[#allocation6 + $0x20] sm:$0xff] }
 0x377   : > { %1762 = vst.msk [vmem:[%s2539_s11 + $0x48] sm:$0xff] %vm1087_vm8, %v1746_v6  ;;  %v1747_v16 = vsel %vm1667_vm2, %v1731_v33, 0.0  ;;  %v1733_v50 = vsub.f32 %v3506_v9, %v3532_v56  ;;  %vm1692_vm12 = vcmp.ne.s32.totalorder %v1676_v58, 4294967196  ;;  %v1788_v11 = vsub.f32 %v1772_v61, %v3427_v47  ;;  %v1835_v47 = vld [vmem:[#allocation6 + $0x10] sm:$0xff]  ;;  %v3596_v9 = vld [vmem:[#allocation5 + $0x40] sm:$0xff]  ;;  %v3599_v7 = vld [vmem:[%s2534_s25 + $0x48] sm:$0xff] }
 0x378   : > { %1763 = vst.msk [vmem:[%s2539_s11 + $0x50] sm:$0xff] %vm1087_vm8, %v1747_v16  ;;  %v1748_v25 = vsel %vm1668_vm6, %v1732_v48, 0.0  ;;  %v1734_v36 = vsub.f32 %v3514_v63, %v3548_v32  ;;  %v3577_v51 = vadd.f32 %v1622_v3, %v1575_v57  ;;  %v1624_v0 = vmul.f32 0.6931472, %v2395_v26  ;;  %v3601_v23 = vld [vmem:[#allocation5 + $0x48] sm:$0xff]  ;;  %1851 = vst.msk [vmem:[%s2553_s22 + $0x10] sm:$0xff] %vm1087_vm8, %v1835_v47 }
 0x379   : > { %1764 = vst.msk [vmem:[%s2539_s11 + $0x58] sm:$0xff] %vm1087_vm8, %v1748_v25  ;;  %v1749_v55 = vsel %vm1669_vm7, %v1733_v50, 0.0  ;;  %v1803_v24 = vsel %vm1691_vm11, %v1787_v5, 0.0  ;;  %v1804_v2 = vsel %vm1692_vm12, %v1788_v11, 0.0  ;;  %1853 = vst.msk [vmem:[%s2553_s22 + $0x20] sm:$0xff] %vm1087_vm8, %v1837_v49  ;;  %v1789_v57 = vsub.f32 %v3541_v17, %v3435_v29  ;;  %v1840_v19 = vld [vmem:[#allocation6 + $0x38] sm:$0xff] }
 0x37a   : > { %1765 = vst.msk [vmem:[%s2539_s11 + $0x60] sm:$0xff] %vm1087_vm8, %v1749_v55  ;;  %v1750_v52 = vsel %vm1670_vm3, %v1734_v36, 0.0  ;;  %v1735_v4 = vsub.f32 %v3534_v8, %v3577_v51  ;;  %v3615_v63 = vadd.f32 %v1624_v0, %v1576_v43  ;;  %1819 = vst.msk [vmem:[%s2548_s19 + $0x10] sm:$0xff] %vm1087_vm8, %v1803_v24  ;;  %v1841_v33 = vld [vmem:[#allocation6 + $0x40] sm:$0xff]  ;;  %v1842_v15 = vld [vmem:[#allocation6 + $0x48] sm:$0xff]  ;;  %vm1694_vm14 = vcmp.ne.s32.totalorder %v3553_v40, 4294967196 }
 0x37b   : > { %1820 = vst.msk [vmem:[%s2548_s19 + $0x18] sm:$0xff] %vm1087_vm8, %v1804_v2  ;;  %1766 = vst.msk [vmem:[%s2539_s11 + $0x68] sm:$0xff] %vm1087_vm8, %v1750_v52  ;;  %v1790_v29 = vsub.f32 %v3555_v27, %v3451_v37  ;;  %vm1695_vm15 = vcmp.ne.s32.totalorder %v3558_v10, 4294967196  ;;  %v1791_v21 = vsub.f32 %v3560_v35, %v3463_v38  ;;  %v1843_v58 = vld [vmem:[#allocation6 + $0x50] sm:$0xff]  ;;  %v1844_v61 = vld [vmem:[#allocation6 + $0x58] sm:$0xff]  ;;  %v1805_v38 = vsel %vm1693_vm13, %v1789_v57, 0.0 }
 0x37c   : > { %1856 = vst.msk [vmem:[%s2553_s22 + $0x38] sm:$0xff] %vm1087_vm8, %v1840_v19  ;;  %1857 = vst.msk [vmem:[%s2553_s22 + $0x40] sm:$0xff] %vm1087_vm8, %v1841_v33  ;;  %v1845_v54 = vld [vmem:[#allocation6 + $0x60] sm:$0xff]  ;;  %v1751_v6 = vsel %vm1671_vm5, %v1735_v4, 0.0  ;;  %v1736_v37 = vsub.f32 %v3566_v12, %v3615_v63  ;;  %vm1696_vm0 = vcmp.ne.s32.totalorder %v3571_v42, 4294967196  ;;  %v1847_v8 = vld [vmem:[#allocation6 + $0x70] sm:$0xff]  ;;  %v1792_v17 = vsub.f32 %v3579_v46, %v3471_v1 }
 0x37d   : > { %1858 = vst.msk [vmem:[%s2553_s22 + $0x48] sm:$0xff] %vm1087_vm8, %v1842_v15  ;;  %1859 = vst.msk [vmem:[%s2553_s22 + $0x50] sm:$0xff] %vm1087_vm8, %v1843_v58  ;;  %v1848_v43 = vld [vmem:[#allocation6 + $0x78] sm:$0xff]  ;;  %v1806_v39 = vsel %vm1694_vm14, %v1790_v29, 0.0  ;;  %v1807_v59 = vsel %vm1695_vm15, %v1791_v21, 0.0  ;;  %vm1697_vm1 = vcmp.ne.s32.totalorder %v3582_v44, 4294967196  ;;  %v1793_v1 = vsub.f32 %v3596_v9, %v3486_v60 }
 0x37e   : > { %1860 = vst.msk [vmem:[%s2553_s22 + $0x58] sm:$0xff] %vm1087_vm8, %v1844_v61  ;;  %1861 = vst.msk [vmem:[%s2553_s22 + $0x60] sm:$0xff] %vm1087_vm8, %v1845_v54  ;;  %v1780_v16 = vld [vmem:[#allocation5 + $0x58] sm:$0xff]  ;;  %v1685_v48 = vld [vmem:[%s2534_s25 + $0x60] sm:$0xff]  ;;  %v1752_v3 = vsel %vm1672_vm10, %v1736_v37, 0.0  ;;  %vm1698_vm2 = vcmp.ne.s32.totalorder %v3599_v7, 4294967196  ;;  %v1794_v40 = vsub.f32 %v3601_v23, %v3495_v28  ;;  %v1795_v60 = vsub.f32 %v3626_v34, %v3504_v22 }
 0x37f   : > { %1767 = vst.msk [vmem:[%s2539_s11 + $0x70] sm:$0xff] %vm1087_vm8, %v1751_v6  ;;  %1821 = vst.msk [vmem:[%s2548_s19 + $0x20] sm:$0xff] %vm1087_vm8, %v1805_v38  ;;  %v1781_v27 = vld [vmem:[#allocation5 + $0x60] sm:$0xff]  ;;  %v1686_v10 = vld [vmem:[%s2534_s25 + $0x68] sm:$0xff]  ;;  %v1808_v18 = vsel %vm1696_vm0, %v1792_v17, 0.0  ;;  %vm1699_vm6 = vcmp.ne.s32.totalorder %v3624_v30, 4294967196  ;;  %v1796_v11 = vsub.f32 %v1780_v16, %v3523_v62 }
 0x380   : > { %1863 = vst.msk [vmem:[%s2553_s22 + $0x70] sm:$0xff] %vm1087_vm8, %v1847_v8  ;;  %1864 = vst.msk [vmem:[%s2553_s22 + $0x78] sm:$0xff] %vm1087_vm8, %v1848_v43  ;;  %v1782_v35 = vld [vmem:[#allocation5 + $0x68] sm:$0xff]  ;;  %vm1700_vm7 = vcmp.ne.s32.totalorder %v3629_v41, 4294967196  ;;  %v1687_v26 = vld [vmem:[%s2534_s25 + $0x70] sm:$0xff]  ;;  %v1809_v12 = vsel %vm1697_vm1, %v1793_v1, 0.0  ;;  %v1797_v45 = vsub.f32 %v1781_v27, %v3532_v56 }
 0x381   : > { %1822 = vst.msk [vmem:[%s2548_s19 + $0x28] sm:$0xff] %vm1087_vm8, %v1806_v39  ;;  %1823 = vst.msk [vmem:[%s2548_s19 + $0x30] sm:$0xff] %vm1087_vm8, %v1807_v59  ;;  %v1783_v28 = vld [vmem:[#allocation5 + $0x70] sm:$0xff]  ;;  %v1688_v50 = vld [vmem:[%s2534_s25 + $0x78] sm:$0xff]  ;;  %v1810_v5 = vsel %vm1698_vm2, %v1794_v40, 0.0  ;;  %vm1701_vm3 = vcmp.ne.s32.totalorder %v1685_v48, 4294967196  ;;  %v1798_v13 = vsub.f32 %v1782_v35, %v3548_v32 }
 0x382   : > { %1768 = vst.msk [vmem:[%s2539_s11 + $0x78] sm:$0xff] %vm1087_vm8, %v1752_v3  ;;  %1824 = vst.msk [vmem:[%s2548_s19 + $0x38] sm:$0xff] %vm1087_vm8, %v1808_v18  ;;  %v1784_v42 = vld [vmem:[#allocation5 + $0x78] sm:$0xff]  ;;  %v1811_v22 = vsel %vm1699_vm6, %v1795_v60, 0.0  ;;  %vm1702_vm4 = vcmp.ne.s32.totalorder %v1686_v10, 4294967196  ;;  %v1812_v62 = vsel %vm1700_vm7, %v1796_v11, 0.0  ;;  %v1799_v25 = vsub.f32 %v1783_v28, %v3577_v51 }
 0x383   : > { %1825 = vst.msk [vmem:[%s2548_s19 + $0x40] sm:$0xff] %vm1087_vm8, %v1809_v12  ;;  %1826 = vst.msk [vmem:[%s2548_s19 + $0x48] sm:$0xff] %vm1087_vm8, %v1810_v5  ;;  %vm1703_vm5 = vcmp.ne.s32.totalorder %v1687_v26, 4294967196  ;;  %vm1704_vm9 = vcmp.ne.s32.totalorder %v1688_v50, 4294967196  ;;  %v1813_v36 = vsel %vm1701_vm3, %v1797_v45, 0.0  ;;  %v1814_v0 = vsel %vm1702_vm4, %v1798_v13, 0.0 }
 0x384   : > { %1827 = vst.msk [vmem:[%s2548_s19 + $0x50] sm:$0xff] %vm1087_vm8, %v1811_v22  ;;  %1828 = vst.msk [vmem:[%s2548_s19 + $0x58] sm:$0xff] %vm1087_vm8, %v1812_v62  ;;  %v1800_v46 = vsub.f32 %v1784_v42, %v3615_v63  ;;  %v1815_v56 = vsel %vm1703_vm5, %v1799_v25, 0.0 }
 0x385   : > { %1829 = vst.msk [vmem:[%s2548_s19 + $0x60] sm:$0xff] %vm1087_vm8, %v1813_v36  ;;  %1830 = vst.msk [vmem:[%s2548_s19 + $0x68] sm:$0xff] %vm1087_vm8, %v1814_v0 }
 0x386   : > { %1831 = vst.msk [vmem:[%s2548_s19 + $0x70] sm:$0xff] %vm1087_vm8, %v1815_v56  ;;  %v1816_v32 = vsel %vm1704_vm9, %v1800_v46, 0.0 }
 0x387   : > { %1832 = vst.msk [vmem:[%s2548_s19 + $0x78] sm:$0xff] %vm1087_vm8, %v1816_v32 }
 0x388 PF: > { %s18_s28 = sadd.s32 1, %s2434_s28   ;;  %s3825_s24 = smov %s2426_s26 }
 0x389   : > { %p15_p10 = scmp.ge.s32.totalorder %s18_s28, 10   ;;  %s3826_s25 = smov %s2430_s27 }
 0x38a   : > { %s3827_s26 = smov %s3830_s29  ;;  %s3828_s27 = smov %s3834_s30 }
 0x38b   :  { %17 = sbr.rel (!%p15_p10) target bundleno = 4 (0x4), region = 114 }

</bundles_post_ra>
